<compile_context>
chip_gen: v5e
topology: v5e:2x2
jax: 0.10.0
libtpu: 0.0.40
codegen_flags: <defaults>
</compile_context>

<pallas_src>
import functools
import math

import jax
import jax.numpy as jnp
from jax.experimental import pallas as pl
from jax.experimental.pallas import tpu as pltpu

# ---- model dimensions (from the PyTorch source) --------------------------------------------
D_MODEL = 32
D_K = 64
D_V = 64
D_FF = 512
PEP_MAX_LEN = 15
HLA_MAX_LEN = 34
LN_EPS = 1e-5           # nn.LayerNorm default eps; fresh LayerNorm => weight=1, bias=0
NEG_INF = -1e9          # masked_fill_ value in ScaledDotProductAttention

N_HEADS = 2             # undefined global in the source, fixed deterministically
N_LAYERS = 1            # undefined global in the source, fixed deterministically
VOCAB_SIZE = 24         # vocab_dict.npy not available; 20 AAs + pad + specials, token 0 = pad


# ---------------------------------------------------------------------------------------------
# Kernel
# ---------------------------------------------------------------------------------------------
def _layer_norm(x):
    """LayerNorm over the last dim with unit gamma / zero beta (fresh nn.LayerNorm(d_model))."""
    mean = jnp.mean(x, axis=-1, keepdims=True)
    var = jnp.mean((x - mean) ** 2, axis=-1, keepdims=True)
    return (x - mean) * jax.lax.rsqrt(var + LN_EPS)


def _encoder_layer_kernel(x_ref, keypad_ref, pe_ref, wq_ref, wk_ref, wv_ref,
                          wo_ref, w1_ref, w2_ref, *out_refs,
                          bb, seq_len, apply_pe, store_attn, mm_dtype):
    """One EncoderLayer for a block of `bb` sequences.

    x_ref:      [bb, L, D_MODEL]        float32   residual stream
    keypad_ref: [bb, 1, L]              int32     1 = key position is padding (seq.eq(0))
    pe_ref:     [L, D_MODEL]            float32   sinusoidal positional encoding
    wq/wk/wv:   [H, D_MODEL, D_K|D_V]   mm_dtype  per-head projection weights
    wo:         [H, D_V, D_MODEL]       mm_dtype  per-head slices of the fc weight
    w1:         [D_MODEL, D_FF]         mm_dtype
    w2:         [D_FF, D_MODEL]         mm_dtype
    out:        [bb, L, D_MODEL]        float32
    attn:       [H, bb, L, L]           float32   (only when store_attn)
    """
    if store_attn:
        out_ref, attn_ref = out_refs
    else:
        (out_ref,) = out_refs

    x = x_ref[...]                                         # [bb, L, D]  f32
    if apply_pe:
        # PositionalEncoding fused into the first layer (dropout = identity at inference).
        x = x + pe_ref[...][None, :, :]

    rows = bb * seq_len
    x2 = x.reshape(rows, D_MODEL)                          # [bb*L, D] slab for MXU matmuls
    xm = x2.astype(mm_dtype)
    keypad = keypad_ref[...] != 0                          # [bb, 1, L]; broadcasts over queries

    scale = 1.0 / math.sqrt(D_K)
    attn_out = None
    for h in range(N_HEADS):                               # static unroll; no stack/concat/slices
        qh = jnp.dot(xm, wq_ref[h], preferred_element_type=jnp.float32)   # [bb*L, D_K]
        kh = jnp.dot(xm, wk_ref[h], preferred_element_type=jnp.float32)   # [bb*L, D_K]
        vh = jnp.dot(xm, wv_ref[h], preferred_element_type=jnp.float32)   # [bb*L, D_V]
        q3 = qh.reshape(bb, seq_len, D_K)
        k3 = kh.reshape(bb, seq_len, D_K)
        v3 = vh.reshape(bb, seq_len, D_V)

        s = jnp.einsum("bqd,bkd->bqk", q3, k3,
                       preferred_element_type=jnp.float32) * scale        # [bb, L, L]
        s = jnp.where(keypad, jnp.float32(NEG_INF), s)                    # masked_fill_
        m = jnp.max(s, axis=-1, keepdims=True)
        e = jnp.exp(s - m)
        p = e * pl.reciprocal(jnp.sum(e, axis=-1, keepdims=True), approx=True)  # softmax(-1)
        if store_attn:
            attn_ref[h] = p                                               # contiguous slab write

        ctx = jnp.einsum("bqk,bkd->bqd", p, v3,
                         preferred_element_type=jnp.float32)              # [bb, L, D_V]
        # Per-head output-projection partial: sum_h ctx_h @ W_O[h] == concat(ctx) @ W_O.
        part = jnp.dot(ctx.reshape(rows, D_V).astype(mm_dtype), wo_ref[h],
                       preferred_element_type=jnp.float32)                # [bb*L, D]
        attn_out = part if attn_out is None else attn_out + part

    y1 = _layer_norm(attn_out + x2)                        # residual + LayerNorm (f32)

    # Position-wise FFN: Linear -> ReLU -> Linear (-> Dropout = identity), residual + LayerNorm.
    h1 = jnp.maximum(jnp.dot(y1.astype(mm_dtype), w1_ref[...],
                             preferred_element_type=jnp.float32), 0.0)    # [bb*L, D_FF]
    ffn = jnp.dot(h1.astype(mm_dtype), w2_ref[...],
                  preferred_element_type=jnp.float32)                     # [bb*L, D]
    out_ref[...] = _layer_norm(ffn + y1).reshape(bb, seq_len, D_MODEL)


# ---------------------------------------------------------------------------------------------
# Wrappers
# ---------------------------------------------------------------------------------------------
def _round_up(n, m):
    return ((n + m - 1) // m) * m


def _choose_block_batch(batch, seq_len, target_rows=256):
    """Rows per grid step >= target_rows (fills the MXU M dim, amortizes per-step overhead),
    while keeping >= 2 grid blocks when the batch allows it (both v7x TensorCores get work)."""
    bb = max(1, -(-target_rows // seq_len))
    bb = min(bb, batch)
    while bb > 1 and -(-batch // bb) < 2:
        bb = (bb + 1) // 2
    return bb


def default_matmul_dtype():
    """bf16 MXU operands on v6e/v7x (f32 accumulation); f32 everywhere on v5e and older."""
    try:
        kind = jax.devices()[0].device_kind.lower()
    except Exception:
        return jnp.float32
    if "v6" in kind or "v7" in kind:
        return jnp.bfloat16
    return jnp.float32


def positional_encoding(seq_len, d_model):
    position = jnp.arange(seq_len, dtype=jnp.float32)[:, None]
    div_term = jnp.exp(jnp.arange(0, d_model, 2, dtype=jnp.float32)
                       * (-math.log(10000.0) / d_model))
    pe = jnp.zeros((seq_len, d_model), dtype=jnp.float32)
    pe = pe.at[:, 0::2].set(jnp.sin(position * div_term))
    pe = pe.at[:, 1::2].set(jnp.cos(position * div_term))
    return pe


def encoder_layer(x, keypad, pe, layer_params, *, apply_pe, return_attn,
                  mm_dtype, block_batch):
    """x: [B, L, D_MODEL] f32 (B % block_batch == 0, L % 8 == 0); keypad: [B, 1, L] int32."""
    B, L, _ = x.shape
    BB = block_batch
    num_blocks = B // BB

    wq = layer_params["wq"].astype(mm_dtype)
    wk = layer_params["wk"].astype(mm_dtype)
    wv = layer_params["wv"].astype(mm_dtype)
    wo = layer_params["wo"].astype(mm_dtype)
    w1 = layer_params["w1"].astype(mm_dtype)
    w2 = layer_params["w2"].astype(mm_dtype)

    kernel = functools.partial(
        _encoder_layer_kernel, bb=BB, seq_len=L, apply_pe=apply_pe,
        store_attn=return_attn, mm_dtype=mm_dtype)

    in_specs = [
        pl.BlockSpec((BB, L, D_MODEL), lambda b: (b, 0, 0)),          # x
        pl.BlockSpec((BB, 1, L), lambda b: (b, 0, 0)),                # per-key pad flags
        pl.BlockSpec((L, D_MODEL), lambda b: (0, 0)),                 # positional encoding
        pl.BlockSpec((N_HEADS, D_MODEL, D_K), lambda b: (0, 0, 0)),   # W_Q
        pl.BlockSpec((N_HEADS, D_MODEL, D_K), lambda b: (0, 0, 0)),   # W_K
        pl.BlockSpec((N_HEADS, D_MODEL, D_V), lambda b: (0, 0, 0)),   # W_V
        pl.BlockSpec((N_HEADS, D_V, D_MODEL), lambda b: (0, 0, 0)),   # fc (output projection)
        pl.BlockSpec((D_MODEL, D_FF), lambda b: (0, 0)),              # FFN w1
        pl.BlockSpec((D_FF, D_MODEL), lambda b: (0, 0)),              # FFN w2
    ]
    out_shapes = [jax.ShapeDtypeStruct((B, L, D_MODEL), jnp.float32)]
    out_specs = [pl.BlockSpec((BB, L, D_MODEL), lambda b: (b, 0, 0))]
    if return_attn:
        # Heads leading so the kernel writes attn_ref[h] in place; one [H, BB, L, L] slab per
        # step.  Transposed back to [B, H, L, L] in the wrapper (layout plumbing, not compute).
        out_shapes.append(jax.ShapeDtypeStruct((N_HEADS, B, L, L), jnp.float32))
        out_specs.append(pl.BlockSpec((N_HEADS, BB, L, L), lambda b: (0, b, 0, 0)))

    # Advisory cost so XLA schedules / overlaps the custom call sensibly.
    rows = B * L
    flops = (2 * rows * D_MODEL * N_HEADS * (2 * D_K + D_V)     # Q/K/V projections
             + 2 * B * N_HEADS * L * L * (D_K + D_V)            # scores + context
             + 2 * rows * N_HEADS * D_V * D_MODEL               # output projection
             + 2 * rows * D_MODEL * D_FF * 2)                   # FFN
    transcendentals = B * N_HEADS * L * L + B * N_HEADS * L + 4 * rows
    weight_bytes = sum(int(w.size) * w.dtype.itemsize for w in (wq, wk, wv, wo, w1, w2))
    bytes_accessed = (2 * rows * D_MODEL * 4 + B * L * 4 + L * D_MODEL * 4 + weight_bytes
                      + (N_HEADS * B * L * L * 4 if return_attn else 0))

    results = pl.pallas_call(
        kernel,
        out_shape=tuple(out_shapes),
        grid_spec=pltpu.PrefetchScalarGridSpec(
            num_scalar_prefetch=0,
            grid=(num_blocks,),
            in_specs=in_specs,
            out_specs=tuple(out_specs)),
        compiler_params=pltpu.CompilerParams(dimension_semantics=("parallel",)),
        cost_estimate=pl.CostEstimate(flops=int(flops),
                                      transcendentals=int(transcendentals),
                                      bytes_accessed=int(bytes_accessed)),
    )(x, keypad, pe, wq, wk, wv, wo, w1, w2)

    if return_attn:
        out, attn = results
        return out, attn
    (out,) = results
    return out, None


def encoder_forward(tokens, params, *, return_attn=True, mm_dtype=None, target_rows=256):
    """Encoder.forward: embedding -> positional encoding -> N_LAYERS x EncoderLayer.

    tokens: [B, L] int32 token ids (0 = padding).
    Returns (enc_outputs [B, L, D_MODEL] f32, list of attn [B, H, L, L]).
    """
    if mm_dtype is None:
        mm_dtype = default_matmul_dtype()
    B, L = tokens.shape

    # Pad the sequence dim to a sublane multiple and the batch dim to the block size.  Extra
    # positions carry token id 0, i.e. they are masked exactly like real padding, so the math
    # on the real rows/columns is unchanged; the padding is sliced off below.
    L_pad = _round_up(L, 8)
    BB = _choose_block_batch(B, L_pad, target_rows)
    B_pad = _round_up(B, BB)
    tok = jnp.pad(tokens.astype(jnp.int32), ((0, B_pad - B), (0, L_pad - L)))

    x = jnp.take(params["emb"], tok, axis=0)                  # nn.Embedding -> [B_pad, L_pad, D]
    keypad = (tok == 0).astype(jnp.int32)[:, None, :]         # seq_k.eq(0)  -> [B_pad, 1, L_pad]
    pe = positional_encoding(L_pad, D_MODEL)                  # added inside the first layer

    attns = []
    for idx, layer in enumerate(params["layers"]):
        x, attn = encoder_layer(x, keypad, pe, layer,
                                apply_pe=(idx == 0), return_attn=return_attn,
                                mm_dtype=mm_dtype, block_batch=BB)
        if return_attn:
            attns.append(jnp.transpose(attn, (1, 0, 2, 3))[:B, :, :L, :L])
    return x[:B, :L, :], attns


def transformer_forward(pep_inputs, hla_inputs, params, *, return_attn=True, mm_dtype=None):
    """Transformer.forward, encoder path: pep_encoder + hla_encoder + concat."""
    pep_out, pep_attns = encoder_forward(pep_inputs, params["pep_encoder"],
                                         return_attn=return_attn, mm_dtype=mm_dtype)
    hla_out, hla_attns = encoder_forward(hla_inputs, params["hla_encoder"],
                                         return_attn=return_attn, mm_dtype=mm_dtype)
    enc_outputs = jnp.concatenate([pep_out, hla_out], axis=1)   # [B, 15 + 34, D_MODEL]
    # TODO(synk): Decoder + projection head skipped (shape-inconsistent in the source; see header).
    return enc_outputs, pep_attns, hla_attns


# ---------------------------------------------------------------------------------------------
# Parameters (deterministic synthetic weights, nn.Linear / nn.Embedding default init)
# ---------------------------------------------------------------------------------------------
def _linear_weight(key, shape, fan_in):
    bound = 1.0 / math.sqrt(fan_in)
    return jax.random.uniform(key, shape, jnp.float32, -bound, bound)


def init_encoder_params(key, vocab_size=VOCAB_SIZE, n_layers=N_LAYERS):
    k_emb, k_layers = jax.random.split(key)
    emb = jax.random.normal(k_emb, (vocab_size, D_MODEL), jnp.float32)   # nn.Embedding ~ N(0,1)
    layers = []
    for l in range(n_layers):
        ks = jax.random.split(jax.random.fold_in(k_layers, l), 6)
        layers.append(dict(
            wq=_linear_weight(ks[0], (N_HEADS, D_MODEL, D_K), D_MODEL),
            wk=_linear_weight(ks[1], (N_HEADS, D_MODEL, D_K), D_MODEL),
            wv=_linear_weight(ks[2], (N_HEADS, D_MODEL, D_V), D_MODEL),
            wo=_linear_weight(ks[3], (N_HEADS, D_V, D_MODEL), N_HEADS * D_V),
            w1=_linear_weight(ks[4], (D_MODEL, D_FF), D_MODEL),
            w2=_linear_weight(ks[5], (D_FF, D_MODEL), D_FF),
        ))
    return dict(emb=emb, layers=layers)


def init_transformer_params(key):
    k_pep, k_hla = jax.random.split(key)
    return dict(pep_encoder=init_encoder_params(k_pep),
                hla_encoder=init_encoder_params(k_hla))


# ---------------------------------------------------------------------------------------------
# Pure-JAX reference (for correctness check only)
# ---------------------------------------------------------------------------------------------
def _reference_encoder_forward(tokens, params):
    B, L = tokens.shape
    x = jnp.take(params["emb"], tokens, axis=0) + positional_encoding(L, D_MODEL)[None]
    keypad = tokens == 0
    hp = "highest"
    attns = []
    for p in params["layers"]:
        q = jnp.einsum("bld,hdk->bhlk", x, p["wq"], precision=hp)
        k = jnp.einsum("bld,hdk->bhlk", x, p["wk"], precision=hp)
        v = jnp.einsum("bld,hdk->bhlk", x, p["wv"], precision=hp)
        s = jnp.einsum("bhqd,bhkd->bhqk", q, k, precision=hp) / math.sqrt(D_K)
        s = jnp.where(keypad[:, None, None, :], NEG_INF, s)
        a = jax.nn.softmax(s, axis=-1)
        attns.append(a)
        ctx = jnp.einsum("bhqk,bhkd->bhqd", a, v, precision=hp)
        attn_out = jnp.einsum("bhqd,hdm->bqm", ctx, p["wo"], precision=hp)
        y1 = _layer_norm(attn_out + x)
        h1 = jax.nn.relu(jnp.einsum("bqm,mf->bqf", y1, p["w1"], precision=hp))
        ffn = jnp.einsum("bqf,fm->bqm", h1, p["w2"], precision=hp)
        x = _layer_norm(ffn + y1)
    return x, attns


# ---------------------------------------------------------------------------------------------
if __name__ == "__main__":
    key = jax.random.PRNGKey(0)
    k_pep, k_hla, k_params = jax.random.split(key, 3)

    B = 2
    pep_inputs = jax.random.randint(k_pep, (B, PEP_MAX_LEN), 1, VOCAB_SIZE, dtype=jnp.int32)
    hla_inputs = jax.random.randint(k_hla, (B, HLA_MAX_LEN), 1, VOCAB_SIZE, dtype=jnp.int32)
    # Trailing padding (token id 0) on one peptide row and one HLA row to exercise the pad mask.
    pep_inputs = jnp.where((jnp.arange(B)[:, None] == 1)
                           & (jnp.arange(PEP_MAX_LEN)[None, :] >= 9), 0, pep_inputs)
    hla_inputs = jnp.where((jnp.arange(B)[:, None] == 0)
                           & (jnp.arange(HLA_MAX_LEN)[None, :] >= 30), 0, hla_inputs)

    params = init_transformer_params(k_params)

    # Correctness check against the pure-JAX reference (f32 matmul path so the comparison is
    # dtype-apples-to-apples; pl.reciprocal(approx=True) keeps the tolerance loose).
    enc_f32, pep_attns, hla_attns = transformer_forward(pep_inputs, hla_inputs, params,
                                                        mm_dtype=jnp.float32)
    ref_pep, ref_pep_attns = _reference_encoder_forward(pep_inputs, params["pep_encoder"])
    ref_hla, ref_hla_attns = _reference_encoder_forward(hla_inputs, params["hla_encoder"])
    ref_enc = jnp.concatenate([ref_pep, ref_hla], axis=1)

    assert enc_f32.shape == (B, PEP_MAX_LEN + HLA_MAX_LEN, D_MODEL)
    assert pep_attns[0].shape == (B, N_HEADS, PEP_MAX_LEN, PEP_MAX_LEN)
    assert hla_attns[0].shape == (B, N_HEADS, HLA_MAX_LEN, HLA_MAX_LEN)
    assert float(jnp.max(jnp.abs(enc_f32 - ref_enc))) < 5e-2
    assert float(jnp.max(jnp.abs(pep_attns[0] - ref_pep_attns[0]))) < 5e-2
    assert float(jnp.max(jnp.abs(hla_attns[0] - ref_hla_attns[0]))) < 5e-2

    # Default (device-tuned) path: bf16 MXU operands on v6e/v7x, f32 elsewhere; jitted end-to-end.
    fwd = jax.jit(transformer_forward)
    enc_outputs, pep_attns, hla_attns = fwd(pep_inputs, hla_inputs, params)
    jax.block_until_ready(enc_outputs)
    jax.block_until_ready(pep_attns)
    jax.block_until_ready(hla_attns)
    assert enc_outputs.shape == (B, PEP_MAX_LEN + HLA_MAX_LEN, D_MODEL)
    assert bool(jnp.isfinite(enc_outputs).all())
    print("KERNEL_OK")
</pallas_src>

<mosaic_0001>
module attributes {stable_mosaic.version = 11 : i64} {
  func.func @_encoder_layer_kernel(%arg0: i32, %arg1: memref<1x16x32xf32, #tpu.memory_space<vmem>>, %arg2: memref<1x1x16xi32, #tpu.memory_space<vmem>>, %arg3: memref<16x32xf32, #tpu.memory_space<vmem>>, %arg4: memref<2x32x64xf32, #tpu.memory_space<vmem>>, %arg5: memref<2x32x64xf32, #tpu.memory_space<vmem>>, %arg6: memref<2x32x64xf32, #tpu.memory_space<vmem>>, %arg7: memref<2x64x32xf32, #tpu.memory_space<vmem>>, %arg8: memref<32x512xf32, #tpu.memory_space<vmem>>, %arg9: memref<512x32xf32, #tpu.memory_space<vmem>>, %arg10: memref<1x16x32xf32, #tpu.memory_space<vmem>>, %arg11: memref<2x1x16x16xf32, #tpu.memory_space<vmem>>) attributes {dimension_semantics = [#tpu.dimension_semantics<parallel>], iteration_bounds = array<i64: 2>, scalar_prefetch = 0 : i64, scratch_operands = 0 : i64, tpu.core_type = #tpu.core_type<tc>, window_params = [{transform_indices = @transform_0, window_bounds = array<i64: 1, 16, 32>}, {transform_indices = @transform_1, window_bounds = array<i64: 1, 1, 16>}, {pipeline_mode = #tpu.pipeline_mode<synchronous>, transform_indices = @transform_2, window_bounds = array<i64: 16, 32>}, {pipeline_mode = #tpu.pipeline_mode<synchronous>, transform_indices = @transform_3, window_bounds = array<i64: 2, 32, 64>}, {pipeline_mode = #tpu.pipeline_mode<synchronous>, transform_indices = @transform_4, window_bounds = array<i64: 2, 32, 64>}, {pipeline_mode = #tpu.pipeline_mode<synchronous>, transform_indices = @transform_5, window_bounds = array<i64: 2, 32, 64>}, {pipeline_mode = #tpu.pipeline_mode<synchronous>, transform_indices = @transform_6, window_bounds = array<i64: 2, 64, 32>}, {pipeline_mode = #tpu.pipeline_mode<synchronous>, transform_indices = @transform_7, window_bounds = array<i64: 32, 512>}, {pipeline_mode = #tpu.pipeline_mode<synchronous>, transform_indices = @transform_8, window_bounds = array<i64: 512, 32>}, {transform_indices = @transform_9, window_bounds = array<i64: 1, 16, 32>}, {transform_indices = @transform_10, window_bounds = array<i64: 2, 1, 16, 16>}]} {
    %c0 = arith.constant 0 : index
    %c0_0 = arith.constant 0 : index
    %c0_1 = arith.constant 0 : index
    %0 = vector.load %arg1[%c0, %c0_0, %c0_1] : memref<1x16x32xf32, #tpu.memory_space<vmem>>, vector<1x16x32xf32>
    %c0_2 = arith.constant 0 : index
    %c0_3 = arith.constant 0 : index
    %1 = vector.load %arg3[%c0_2, %c0_3] : memref<16x32xf32, #tpu.memory_space<vmem>>, vector<16x32xf32>
    %2 = vector.shape_cast %1 : vector<16x32xf32> to vector<1x16x32xf32>
    %3 = arith.addf %0, %2 : vector<1x16x32xf32>
    %4 = vector.shape_cast %3 : vector<1x16x32xf32> to vector<16x32xf32>
    %c0_4 = arith.constant 0 : index
    %c0_5 = arith.constant 0 : index
    %c0_6 = arith.constant 0 : index
    %5 = vector.load %arg2[%c0_4, %c0_5, %c0_6] : memref<1x1x16xi32, #tpu.memory_space<vmem>>, vector<1x1x16xi32>
    %c0_i32 = arith.constant 0 : i32
    %6 = vector.broadcast %c0_i32 : i32 to vector<1x1x16xi32>
    %7 = arith.cmpi ne, %5, %6 : vector<1x1x16xi32>
    %c0_7 = arith.constant 0 : index
    %c0_8 = arith.constant 0 : index
    %c0_9 = arith.constant 0 : index
    %8 = vector.load %arg4[%c0_7, %c0_8, %c0_9] : memref<2x32x64xf32, #tpu.memory_space<vmem>>, vector<1x32x64xf32>
    %9 = vector.shape_cast %8 : vector<1x32x64xf32> to vector<32x64xf32>
    %cst = arith.constant dense<0.000000e+00> : vector<16x64xf32>
    %10 = tpu.matmul %4, %9, %cst {dimension_numbers = #tpu.dot_dimension_numbers<[1], [0], [0], [1], [0, 0, 1, 1], [], []>} : vector<16x32xf32>, vector<32x64xf32>, vector<16x64xf32> -> vector<16x64xf32>
    %c0_10 = arith.constant 0 : index
    %c0_11 = arith.constant 0 : index
    %c0_12 = arith.constant 0 : index
    %11 = vector.load %arg5[%c0_10, %c0_11, %c0_12] : memref<2x32x64xf32, #tpu.memory_space<vmem>>, vector<1x32x64xf32>
    %12 = vector.shape_cast %11 : vector<1x32x64xf32> to vector<32x64xf32>
    %cst_13 = arith.constant dense<0.000000e+00> : vector<16x64xf32>
    %13 = tpu.matmul %4, %12, %cst_13 {dimension_numbers = #tpu.dot_dimension_numbers<[1], [0], [0], [1], [0, 0, 1, 1], [], []>} : vector<16x32xf32>, vector<32x64xf32>, vector<16x64xf32> -> vector<16x64xf32>
    %c0_14 = arith.constant 0 : index
    %c0_15 = arith.constant 0 : index
    %c0_16 = arith.constant 0 : index
    %14 = vector.load %arg6[%c0_14, %c0_15, %c0_16] : memref<2x32x64xf32, #tpu.memory_space<vmem>>, vector<1x32x64xf32>
    %15 = vector.shape_cast %14 : vector<1x32x64xf32> to vector<32x64xf32>
    %cst_17 = arith.constant dense<0.000000e+00> : vector<16x64xf32>
    %16 = tpu.matmul %4, %15, %cst_17 {dimension_numbers = #tpu.dot_dimension_numbers<[1], [0], [0], [1], [0, 0, 1, 1], [], []>} : vector<16x32xf32>, vector<32x64xf32>, vector<16x64xf32> -> vector<16x64xf32>
    %17 = vector.shape_cast %10 : vector<16x64xf32> to vector<1x16x64xf32>
    %18 = vector.shape_cast %13 : vector<16x64xf32> to vector<1x16x64xf32>
    %19 = vector.shape_cast %16 : vector<16x64xf32> to vector<1x16x64xf32>
    "tpu.trace_start"() <{level = 10 : i32, message = "bqd,bkd->bqk"}> : () -> ()
    %cst_18 = arith.constant dense<0.000000e+00> : vector<1x16x16xf32>
    %20 = tpu.matmul %17, %18, %cst_18 {dimension_numbers = #tpu.dot_dimension_numbers<[2], [2], [1], [1], [0, 0, 0, 1, 1, 1], [0], [0]>} : vector<1x16x64xf32>, vector<1x16x64xf32>, vector<1x16x16xf32> -> vector<1x16x16xf32>
    "tpu.trace_stop"() : () -> ()
    %cst_19 = arith.constant 1.250000e-01 : f32
    %21 = vector.broadcast %cst_19 : f32 to vector<1x16x16xf32>
    %22 = arith.mulf %20, %21 : vector<1x16x16xf32>
    %cst_20 = arith.constant -1.000000e+09 : f32
    %23 = vector.shape_cast %7 : vector<1x1x16xi1> to vector<1x1x16xi1>
    %24 = vector.broadcast %23 : vector<1x1x16xi1> to vector<1x16x16xi1>
    %25 = vector.broadcast %cst_20 : f32 to vector<1x16x16xf32>
    %26 = arith.select %24, %25, %22 : vector<1x16x16xi1>, vector<1x16x16xf32>
    %cst_21 = arith.constant dense<0xFF800000> : vector<1x16xf32>
    %27 = vector.multi_reduction <maximumf>, %26, %cst_21 [2] : vector<1x16x16xf32> to vector<1x16xf32>
    %28 = vector.shape_cast %27 : vector<1x16xf32> to vector<1x16x1xf32>
    %29 = vector.broadcast %28 : vector<1x16x1xf32> to vector<1x16x16xf32>
    %30 = arith.subf %26, %29 : vector<1x16x16xf32>
    %31 = math.exp %30 : vector<1x16x16xf32>
    %cst_22 = arith.constant dense<0.000000e+00> : vector<1x16xf32>
    %32 = vector.multi_reduction <add>, %31, %cst_22 [2] : vector<1x16x16xf32> to vector<1x16xf32>
    %33 = vector.shape_cast %32 : vector<1x16xf32> to vector<1x16x1xf32>
    %34 = tpu.reciprocal %33 {approx = true} : vector<1x16x1xf32> -> vector<1x16x1xf32>
    %35 = vector.broadcast %34 : vector<1x16x1xf32> to vector<1x16x16xf32>
    %36 = arith.mulf %31, %35 : vector<1x16x16xf32>
    %c0_23 = arith.constant 0 : index
    %c0_24 = arith.constant 0 : index
    %c0_25 = arith.constant 0 : index
    %c0_26 = arith.constant 0 : index
    %37 = vector.load %arg11[%c0_23, %c0_24, %c0_25, %c0_26] : memref<2x1x16x16xf32, #tpu.memory_space<vmem>>, vector<1x1x16x16xf32>
    %38 = vector.shape_cast %37 : vector<1x1x16x16xf32> to vector<1x16x16xf32>
    %39 = vector.shape_cast %36 : vector<1x16x16xf32> to vector<1x1x16x16xf32>
    tpu.vector_store %arg11[%c0_23, %c0_24, %c0_25, %c0_26], %39 {strides = array<i32>} : memref<2x1x16x16xf32, #tpu.memory_space<vmem>>, vector<1x1x16x16xf32>,
    "tpu.trace_start"() <{level = 10 : i32, message = "bqk,bkd->bqd"}> : () -> ()
    %cst_27 = arith.constant dense<0.000000e+00> : vector<1x16x64xf32>
    %40 = tpu.matmul %36, %19, %cst_27 {dimension_numbers = #tpu.dot_dimension_numbers<[2], [1], [1], [2], [0, 0, 0, 1, 1, 2], [0], [0]>} : vector<1x16x16xf32>, vector<1x16x64xf32>, vector<1x16x64xf32> -> vector<1x16x64xf32>
    "tpu.trace_stop"() : () -> ()
    %41 = vector.shape_cast %40 : vector<1x16x64xf32> to vector<16x64xf32>
    %c0_28 = arith.constant 0 : index
    %c0_29 = arith.constant 0 : index
    %c0_30 = arith.constant 0 : index
    %42 = vector.load %arg7[%c0_28, %c0_29, %c0_30] : memref<2x64x32xf32, #tpu.memory_space<vmem>>, vector<1x64x32xf32>
    %43 = vector.shape_cast %42 : vector<1x64x32xf32> to vector<64x32xf32>
    %cst_31 = arith.constant dense<0.000000e+00> : vector<16x32xf32>
    %44 = tpu.matmul %41, %43, %cst_31 {dimension_numbers = #tpu.dot_dimension_numbers<[1], [0], [0], [1], [0, 0, 1, 1], [], []>} : vector<16x64xf32>, vector<64x32xf32>, vector<16x32xf32> -> vector<16x32xf32>
    %c1 = arith.constant 1 : index
    %c0_32 = arith.constant 0 : index
    %c0_33 = arith.constant 0 : index
    %45 = vector.load %arg4[%c1, %c0_32, %c0_33] : memref<2x32x64xf32, #tpu.memory_space<vmem>>, vector<1x32x64xf32>
    %46 = vector.shape_cast %45 : vector<1x32x64xf32> to vector<32x64xf32>
    %cst_34 = arith.constant dense<0.000000e+00> : vector<16x64xf32>
    %47 = tpu.matmul %4, %46, %cst_34 {dimension_numbers = #tpu.dot_dimension_numbers<[1], [0], [0], [1], [0, 0, 1, 1], [], []>} : vector<16x32xf32>, vector<32x64xf32>, vector<16x64xf32> -> vector<16x64xf32>
    %c1_35 = arith.constant 1 : index
    %c0_36 = arith.constant 0 : index
    %c0_37 = arith.constant 0 : index
    %48 = vector.load %arg5[%c1_35, %c0_36, %c0_37] : memref<2x32x64xf32, #tpu.memory_space<vmem>>, vector<1x32x64xf32>
    %49 = vector.shape_cast %48 : vector<1x32x64xf32> to vector<32x64xf32>
    %cst_38 = arith.constant dense<0.000000e+00> : vector<16x64xf32>
    %50 = tpu.matmul %4, %49, %cst_38 {dimension_numbers = #tpu.dot_dimension_numbers<[1], [0], [0], [1], [0, 0, 1, 1], [], []>} : vector<16x32xf32>, vector<32x64xf32>, vector<16x64xf32> -> vector<16x64xf32>
    %c1_39 = arith.constant 1 : index
    %c0_40 = arith.constant 0 : index
    %c0_41 = arith.constant 0 : index
    %51 = vector.load %arg6[%c1_39, %c0_40, %c0_41] : memref<2x32x64xf32, #tpu.memory_space<vmem>>, vector<1x32x64xf32>
    %52 = vector.shape_cast %51 : vector<1x32x64xf32> to vector<32x64xf32>
    %cst_42 = arith.constant dense<0.000000e+00> : vector<16x64xf32>
    %53 = tpu.matmul %4, %52, %cst_42 {dimension_numbers = #tpu.dot_dimension_numbers<[1], [0], [0], [1], [0, 0, 1, 1], [], []>} : vector<16x32xf32>, vector<32x64xf32>, vector<16x64xf32> -> vector<16x64xf32>
    %54 = vector.shape_cast %47 : vector<16x64xf32> to vector<1x16x64xf32>
    %55 = vector.shape_cast %50 : vector<16x64xf32> to vector<1x16x64xf32>
    %56 = vector.shape_cast %53 : vector<16x64xf32> to vector<1x16x64xf32>
    "tpu.trace_start"() <{level = 10 : i32, message = "bqd,bkd->bqk"}> : () -> ()
    %cst_43 = arith.constant dense<0.000000e+00> : vector<1x16x16xf32>
    %57 = tpu.matmul %54, %55, %cst_43 {dimension_numbers = #tpu.dot_dimension_numbers<[2], [2], [1], [1], [0, 0, 0, 1, 1, 1], [0], [0]>} : vector<1x16x64xf32>, vector<1x16x64xf32>, vector<1x16x16xf32> -> vector<1x16x16xf32>
    "tpu.trace_stop"() : () -> ()
    %cst_44 = arith.constant 1.250000e-01 : f32
    %58 = vector.broadcast %cst_44 : f32 to vector<1x16x16xf32>
    %59 = arith.mulf %57, %58 : vector<1x16x16xf32>
    %cst_45 = arith.constant -1.000000e+09 : f32
    %60 = vector.shape_cast %7 : vector<1x1x16xi1> to vector<1x1x16xi1>
    %61 = vector.broadcast %60 : vector<1x1x16xi1> to vector<1x16x16xi1>
    %62 = vector.broadcast %cst_45 : f32 to vector<1x16x16xf32>
    %63 = arith.select %61, %62, %59 : vector<1x16x16xi1>, vector<1x16x16xf32>
    %cst_46 = arith.constant dense<0xFF800000> : vector<1x16xf32>
    %64 = vector.multi_reduction <maximumf>, %63, %cst_46 [2] : vector<1x16x16xf32> to vector<1x16xf32>
    %65 = vector.shape_cast %64 : vector<1x16xf32> to vector<1x16x1xf32>
    %66 = vector.broadcast %65 : vector<1x16x1xf32> to vector<1x16x16xf32>
    %67 = arith.subf %63, %66 : vector<1x16x16xf32>
    %68 = math.exp %67 : vector<1x16x16xf32>
    %cst_47 = arith.constant dense<0.000000e+00> : vector<1x16xf32>
    %69 = vector.multi_reduction <add>, %68, %cst_47 [2] : vector<1x16x16xf32> to vector<1x16xf32>
    %70 = vector.shape_cast %69 : vector<1x16xf32> to vector<1x16x1xf32>
    %71 = tpu.reciprocal %70 {approx = true} : vector<1x16x1xf32> -> vector<1x16x1xf32>
    %72 = vector.broadcast %71 : vector<1x16x1xf32> to vector<1x16x16xf32>
    %73 = arith.mulf %68, %72 : vector<1x16x16xf32>
    %c1_48 = arith.constant 1 : index
    %c0_49 = arith.constant 0 : index
    %c0_50 = arith.constant 0 : index
    %c0_51 = arith.constant 0 : index
    %74 = vector.load %arg11[%c1_48, %c0_49, %c0_50, %c0_51] : memref<2x1x16x16xf32, #tpu.memory_space<vmem>>, vector<1x1x16x16xf32>
    %75 = vector.shape_cast %74 : vector<1x1x16x16xf32> to vector<1x16x16xf32>
    %76 = vector.shape_cast %73 : vector<1x16x16xf32> to vector<1x1x16x16xf32>
    tpu.vector_store %arg11[%c1_48, %c0_49, %c0_50, %c0_51], %76 {strides = array<i32>} : memref<2x1x16x16xf32, #tpu.memory_space<vmem>>, vector<1x1x16x16xf32>,
    "tpu.trace_start"() <{level = 10 : i32, message = "bqk,bkd->bqd"}> : () -> ()
    %cst_52 = arith.constant dense<0.000000e+00> : vector<1x16x64xf32>
    %77 = tpu.matmul %73, %56, %cst_52 {dimension_numbers = #tpu.dot_dimension_numbers<[2], [1], [1], [2], [0, 0, 0, 1, 1, 2], [0], [0]>} : vector<1x16x16xf32>, vector<1x16x64xf32>, vector<1x16x64xf32> -> vector<1x16x64xf32>
    "tpu.trace_stop"() : () -> ()
    %78 = vector.shape_cast %77 : vector<1x16x64xf32> to vector<16x64xf32>
    %c1_53 = arith.constant 1 : index
    %c0_54 = arith.constant 0 : index
    %c0_55 = arith.constant 0 : index
    %79 = vector.load %arg7[%c1_53, %c0_54, %c0_55] : memref<2x64x32xf32, #tpu.memory_space<vmem>>, vector<1x64x32xf32>
    %80 = vector.shape_cast %79 : vector<1x64x32xf32> to vector<64x32xf32>
    %cst_56 = arith.constant dense<0.000000e+00> : vector<16x32xf32>
    %81 = tpu.matmul %78, %80, %cst_56 {dimension_numbers = #tpu.dot_dimension_numbers<[1], [0], [0], [1], [0, 0, 1, 1], [], []>} : vector<16x64xf32>, vector<64x32xf32>, vector<16x32xf32> -> vector<16x32xf32>
    %82 = arith.addf %44, %81 : vector<16x32xf32>
    %83 = arith.addf %82, %4 : vector<16x32xf32>
    %cst_57 = arith.constant dense<0.000000e+00> : vector<16xf32>
    %84 = vector.multi_reduction <add>, %83, %cst_57 [1] : vector<16x32xf32> to vector<16xf32>
    %85 = vector.shape_cast %84 : vector<16xf32> to vector<16x1xf32>
    %cst_58 = arith.constant 3.200000e+01 : f32
    %86 = vector.broadcast %cst_58 : f32 to vector<16x1xf32>
    %87 = arith.divf %85, %86 : vector<16x1xf32>
    %88 = vector.broadcast %87 : vector<16x1xf32> to vector<16x32xf32>
    %89 = arith.subf %83, %88 : vector<16x32xf32>
    %90 = arith.mulf %89, %89 : vector<16x32xf32>
    %cst_59 = arith.constant dense<0.000000e+00> : vector<16xf32>
    %91 = vector.multi_reduction <add>, %90, %cst_59 [1] : vector<16x32xf32> to vector<16xf32>
    %92 = vector.shape_cast %91 : vector<16xf32> to vector<16x1xf32>
    %cst_60 = arith.constant 3.200000e+01 : f32
    %93 = vector.broadcast %cst_60 : f32 to vector<16x1xf32>
    %94 = arith.divf %92, %93 : vector<16x1xf32>
    %95 = vector.broadcast %87 : vector<16x1xf32> to vector<16x32xf32>
    %96 = arith.subf %83, %95 : vector<16x32xf32>
    %cst_61 = arith.constant 9.99999974E-6 : f32
    %97 = vector.broadcast %cst_61 : f32 to vector<16x1xf32>
    %98 = arith.addf %94, %97 : vector<16x1xf32>
    %99 = math.rsqrt %98 : vector<16x1xf32>
    %100 = vector.broadcast %99 : vector<16x1xf32> to vector<16x32xf32>
    %101 = arith.mulf %96, %100 : vector<16x32xf32>
    %c0_62 = arith.constant 0 : index
    %c0_63 = arith.constant 0 : index
    %102 = vector.load %arg8[%c0_62, %c0_63] : memref<32x512xf32, #tpu.memory_space<vmem>>, vector<32x512xf32>
    %cst_64 = arith.constant dense<0.000000e+00> : vector<16x512xf32>
    %103 = tpu.matmul %101, %102, %cst_64 {dimension_numbers = #tpu.dot_dimension_numbers<[1], [0], [0], [1], [0, 0, 1, 1], [], []>} : vector<16x32xf32>, vector<32x512xf32>, vector<16x512xf32> -> vector<16x512xf32>
    %cst_65 = arith.constant 0.000000e+00 : f32
    %104 = vector.broadcast %cst_65 : f32 to vector<16x512xf32>
    %105 = arith.maximumf %103, %104 : vector<16x512xf32>
    %c0_66 = arith.constant 0 : index
    %c0_67 = arith.constant 0 : index
    %106 = vector.load %arg9[%c0_66, %c0_67] : memref<512x32xf32, #tpu.memory_space<vmem>>, vector<512x32xf32>
    %cst_68 = arith.constant dense<0.000000e+00> : vector<16x32xf32>
    %107 = tpu.matmul %105, %106, %cst_68 {dimension_numbers = #tpu.dot_dimension_numbers<[1], [0], [0], [1], [0, 0, 1, 1], [], []>} : vector<16x512xf32>, vector<512x32xf32>, vector<16x32xf32> -> vector<16x32xf32>
    %108 = arith.addf %107, %101 : vector<16x32xf32>
    %cst_69 = arith.constant dense<0.000000e+00> : vector<16xf32>
    %109 = vector.multi_reduction <add>, %108, %cst_69 [1] : vector<16x32xf32> to vector<16xf32>
    %110 = vector.shape_cast %109 : vector<16xf32> to vector<16x1xf32>
    %cst_70 = arith.constant 3.200000e+01 : f32
    %111 = vector.broadcast %cst_70 : f32 to vector<16x1xf32>
    %112 = arith.divf %110, %111 : vector<16x1xf32>
    %113 = vector.broadcast %112 : vector<16x1xf32> to vector<16x32xf32>
    %114 = arith.subf %108, %113 : vector<16x32xf32>
    %115 = arith.mulf %114, %114 : vector<16x32xf32>
    %cst_71 = arith.constant dense<0.000000e+00> : vector<16xf32>
    %116 = vector.multi_reduction <add>, %115, %cst_71 [1] : vector<16x32xf32> to vector<16xf32>
    %117 = vector.shape_cast %116 : vector<16xf32> to vector<16x1xf32>
    %cst_72 = arith.constant 3.200000e+01 : f32
    %118 = vector.broadcast %cst_72 : f32 to vector<16x1xf32>
    %119 = arith.divf %117, %118 : vector<16x1xf32>
    %120 = vector.broadcast %112 : vector<16x1xf32> to vector<16x32xf32>
    %121 = arith.subf %108, %120 : vector<16x32xf32>
    %cst_73 = arith.constant 9.99999974E-6 : f32
    %122 = vector.broadcast %cst_73 : f32 to vector<16x1xf32>
    %123 = arith.addf %119, %122 : vector<16x1xf32>
    %124 = math.rsqrt %123 : vector<16x1xf32>
    %125 = vector.broadcast %124 : vector<16x1xf32> to vector<16x32xf32>
    %126 = arith.mulf %121, %125 : vector<16x32xf32>
    %127 = vector.shape_cast %126 : vector<16x32xf32> to vector<1x16x32xf32>
    %c0_74 = arith.constant 0 : index
    %c0_75 = arith.constant 0 : index
    %c0_76 = arith.constant 0 : index
    %128 = vector.load %arg10[%c0_74, %c0_75, %c0_76] : memref<1x16x32xf32, #tpu.memory_space<vmem>>, vector<1x16x32xf32>
    tpu.vector_store %arg10[%c0_74, %c0_75, %c0_76], %127 {strides = array<i32>} : memref<1x16x32xf32, #tpu.memory_space<vmem>>, vector<1x16x32xf32>,
    return
  }
  func.func @transform_0(%arg0: i32) -> (i32, i32, i32) {
    %c0_i32 = arith.constant 0 : i32
    %c0_i32_0 = arith.constant 0 : i32
    %c0_i32_1 = arith.constant 0 : i32
    return %arg0, %c0_i32, %c0_i32_0 : i32, i32, i32
  }
  func.func @transform_1(%arg0: i32) -> (i32, i32, i32) {
    %c0_i32 = arith.constant 0 : i32
    %c0_i32_0 = arith.constant 0 : i32
    %c0_i32_1 = arith.constant 0 : i32
    return %arg0, %c0_i32, %c0_i32_0 : i32, i32, i32
  }
  func.func @transform_2(%arg0: i32) -> (i32, i32) {
    %c0_i32 = arith.constant 0 : i32
    %c0_i32_0 = arith.constant 0 : i32
    %c0_i32_1 = arith.constant 0 : i32
    return %c0_i32, %c0_i32_0 : i32, i32
  }
  func.func @transform_3(%arg0: i32) -> (i32, i32, i32) {
    %c0_i32 = arith.constant 0 : i32
    %c0_i32_0 = arith.constant 0 : i32
    %c0_i32_1 = arith.constant 0 : i32
    %c0_i32_2 = arith.constant 0 : i32
    return %c0_i32, %c0_i32_0, %c0_i32_1 : i32, i32, i32
  }
  func.func @transform_4(%arg0: i32) -> (i32, i32, i32) {
    %c0_i32 = arith.constant 0 : i32
    %c0_i32_0 = arith.constant 0 : i32
    %c0_i32_1 = arith.constant 0 : i32
    %c0_i32_2 = arith.constant 0 : i32
    return %c0_i32, %c0_i32_0, %c0_i32_1 : i32, i32, i32
  }
  func.func @transform_5(%arg0: i32) -> (i32, i32, i32) {
    %c0_i32 = arith.constant 0 : i32
    %c0_i32_0 = arith.constant 0 : i32
    %c0_i32_1 = arith.constant 0 : i32
    %c0_i32_2 = arith.constant 0 : i32
    return %c0_i32, %c0_i32_0, %c0_i32_1 : i32, i32, i32
  }
  func.func @transform_6(%arg0: i32) -> (i32, i32, i32) {
    %c0_i32 = arith.constant 0 : i32
    %c0_i32_0 = arith.constant 0 : i32
    %c0_i32_1 = arith.constant 0 : i32
    %c0_i32_2 = arith.constant 0 : i32
    return %c0_i32, %c0_i32_0, %c0_i32_1 : i32, i32, i32
  }
  func.func @transform_7(%arg0: i32) -> (i32, i32) {
    %c0_i32 = arith.constant 0 : i32
    %c0_i32_0 = arith.constant 0 : i32
    %c0_i32_1 = arith.constant 0 : i32
    return %c0_i32, %c0_i32_0 : i32, i32
  }
  func.func @transform_8(%arg0: i32) -> (i32, i32) {
    %c0_i32 = arith.constant 0 : i32
    %c0_i32_0 = arith.constant 0 : i32
    %c0_i32_1 = arith.constant 0 : i32
    return %c0_i32, %c0_i32_0 : i32, i32
  }
  func.func @transform_9(%arg0: i32) -> (i32, i32, i32) {
    %c0_i32 = arith.constant 0 : i32
    %c0_i32_0 = arith.constant 0 : i32
    %c0_i32_1 = arith.constant 0 : i32
    return %arg0, %c0_i32, %c0_i32_0 : i32, i32, i32
  }
  func.func @transform_10(%arg0: i32) -> (i32, i32, i32, i32) {
    %c0_i32 = arith.constant 0 : i32
    %c0_i32_0 = arith.constant 0 : i32
    %c0_i32_1 = arith.constant 0 : i32
    %c0_i32_2 = arith.constant 0 : i32
    return %c0_i32, %arg0, %c0_i32_0, %c0_i32_1 : i32, i32, i32, i32
  }
}

</mosaic_0001>

<bundles_post_ra>
// kernel: tpu_custom_call.1
= control target key start
LH: loop header
LB: loop body
LE: loop exit
PB: predicated region body
PF: predicated region fallthrough
CT: control target
= control target key end

     0   :  { %s2293_s0 = inlined_call_operand.vmem [shape: f32[2,16,32], index: 0, kind: input, shape index: {}]   ;;  %s2294_s1 = inlined_call_operand.vmem [shape: s32[2,1,16], index: 1, kind: input, shape index: {}]   ;;  %s2295_s2 = inlined_call_operand.vmem [shape: f32[16,32], index: 2, kind: input, shape index: {}]   ;;  %s2296_s3 = inlined_call_operand.vmem [shape: f32[2,32,64], index: 3, kind: input, shape index: {}]   ;;  %s2297_s4 = inlined_call_operand.vmem [shape: f32[2,32,64], index: 4, kind: input, shape index: {}]   ;;  %s2298_s5 = inlined_call_operand.vmem [shape: f32[2,32,64], index: 5, kind: input, shape index: {}]   ;;  %s2299_s6 = inlined_call_operand.vmem [shape: f32[2,64,32], index: 6, kind: input, shape index: {}]   ;;  %s2300_s7 = inlined_call_operand.vmem [shape: f32[32,512], index: 7, kind: input, shape index: {}]   ;;  %s2301_s8 = inlined_call_operand.vmem [shape: f32[512,32], index: 8, kind: input, shape index: {}]   ;;  %s2302_s9 = inlined_call_operand.hbm [shape: f32[2,16,32], index: 9, kind: output, shape index: {0}]   ;;  %s2303_s10 = inlined_call_operand.hbm [shape: f32[2,2,16,16], index: 10, kind: output, shape index: {1}]  }
   0x1   :  { %2306 = sst [smem:[#allocation12_spill]] %s2293_s0 }
   0x2   :  { %2307 = sst [smem:[#allocation13_spill]] %s2294_s1 }
   0x3   :  { %2308 = sst [smem:[#allocation14_spill]] %s2295_s2 }
   0x4   :  { %2309 = sst [smem:[#allocation15_spill]] %s2296_s3 }
   0x5   :  { %16 = vsyncpa [#allocation3], 0 }
   0x6   :  { %18 = vsyncpa [#allocation3 + $0x1], 0 }
   0x7   :  { %19 = vsyncpa [#allocation5], 0 }
   0x8   :  { %21 = vsyncpa [#allocation5 + $0x1], 0  ;;  %s1668_s13 = smov 0   ;;  %s1670_s14 = smov 0  }
   0x9   :  { %s1672_s15 = smov 0   ;;  %s1674_s16 = smov 0  }
   0xa LB: > { %2310 = sst [smem:[#allocation10_spill]] %s1596_s15  ;;  %s1689_s17 = sadd.s32 4294967295, %s1600_s16   ;;  %s1600_s16 = sphi %s1674_s16, %s2325_s16   ;;  %s1596_s15 = sphi %s1672_s15, %s2322_s15   ;;  %s1592_s14 = sphi %s1670_s14, %s2324_s14   ;;  %s1588_s13 = sphi %s1668_s13, %s2323_s13  }
   0xb   : > { %s1370_s18 = sadd.s32 4294967294, %s1600_s16   ;;  %s1693_s19 = sadd.s32 1, %s1600_s16  }
   0xc   : > { %s233_s20 = sadd.s32 1, %s1596_s15  ;;  %s230_s21 = ssub.s32 %s1600_s16, %s1693_s19 }
   0xd   : > { %p243_p0 = scmp.ne.s32.totalorder %s1596_s15, %s1592_s14  ;;  %p231_p1 = scmp.eq.s32.totalorder %s230_s21, 0 }
   0xe   : > { %p244_p2 = scmp.eq.s32.totalorder %s1689_s17, 1  ;;  %p249_p3 = scmp.ne.s32.totalorder %s1592_s14, %s1588_s13 }
   0xf   : > { %p250_p4 = scmp.eq.s32.totalorder %s1370_s18, 1  ;;  %p1373_p7 = scmp.ge.s32.totalorder %s1600_s16, 1 }
  0x10   : > { %s1704_s22 = scalar_select %p231_p1, %s1596_s15, %s233_s20  }
  0x11   : > { %p1706_p5 = por %p244_p2, %p243_p0  ;;  %p1710_p6 = por %p250_p4, %p249_p3 }
  0x12   : > { %2311 = sst [smem:[#allocation11_spill]] %s1704_s22  ;;  %p329_p8 = scmp.lt.s32.totalorder %s1600_s16, 3 }
  0x14   : > { %p330_p9 = pnand %p1373_p7, %p329_p8 }
  0x15   : > { %p375_p10 = scmp.lt.s32.totalorder (!%p330_p9), %s1689_s17, 1  ;;  %s2314_s3 = sld [smem:[#allocation15_spill]] (!%p330_p9) }
  0x16   : > { %333 = sbr.rel (%p330_p9) target bundleno = 2048 (0x800), region = 56  ;;  %s2315_s2 = sld [smem:[#allocation14_spill]] (!%p330_p9) }
  0x17   : > { %s2316_s0 = sld [smem:[#allocation12_spill]] (!%p330_p9)  ;;  %s1833_s27 = sand.u32 (!%p330_p9), 1, %s1592_s14  }
  0x18   : > { %s2317_s1 = sld [smem:[#allocation13_spill]] (!%p330_p9)  ;;  %s1375_s11 = sshll.u32 (!%p330_p9), %s1833_s27, 5 }
  0x19   : > { %s1855_s26 = scalar_lea.vmem (!%p330_p9), [#allocation4], %s1375_s11  ;;  %s1374_s30 = sshll.u32 (!%p330_p9), %s1833_s27, 4 }
  0x1a   : > { %s2305_s11 = sshll.u32 (!%p330_p9), %s1689_s17, 4  ;;  %s367_s22 = scalar_lea.vmem (!%p330_p9), [#allocation2], %s1374_s30 }
  0x1b   : > { %v428_v0 = vld [vmem:[%s2297_s4 + $0x18] sm:$0xff]  ;;  %v427_v1 = vld [vmem:[%s2297_s4 + $0x10] sm:$0xff]  ;;  %v426_v3 = vld [vmem:[%s2297_s4 + $0x8] sm:$0xff]  ;;  %s1730_s18 = scalar_select %p375_p10, %s1689_s17, 1  ;;  %vm395_vm0 = vcmask 261120   ;;  %vm479_vm1 = vcmask 523264  }
  0x1c   : > { %441 = vmatpush.msra.mxu1 %v428_v0  ;;  %v394_v2 = vld [vmem:[%s2314_s3 + $0x18] sm:$0xff]  ;;  %v393_v4 = vld [vmem:[%s2314_s3 + $0x10] sm:$0xff]  ;;  %v392_v5 = vld [vmem:[%s2314_s3 + $0x8] sm:$0xff]  ;;  %v1602_v26 = vmov 0   ;;  %vm522_vm4 = vcmask 130048   ;;  %s1222_s21 = scalar_lea.hbm %s2302_s9, %s2305_s11  ;;  %s1223_s25 = sshll.u32 %s367_s22, 4  ;;  %s1224_s25 = int_to_ptr.vmem [resolvable:$true] %s1223_s25 }
  0x1d   : > { %414 = vmatpush.msra.mxu0 %v394_v2  ;;  %v425_v6 = vld [vmem:[%s2297_s4] sm:$0xff]  ;;  %s1444_s29 = sshll.u32 %s1730_s18, 4  ;;  %v386_v12 = vld [vmem:[%s2315_s2 + $0x8] sm:$0xff]  ;;  %v455_v18 = vld [vmem:[%s2298_s5 + $0x18] sm:$0xff]  ;;  %s1225_s15 = sshll.u32 %s1222_s21, 4  ;;  %s1226_s15 = int_to_ptr.hbm [resolvable:$true] %s1225_s15 }
  0x1e   : > { %442 = vmatpush.msra.mxu1 %v427_v1  ;;  %v385_v7 = vld [vmem:[%s2315_s2] sm:$0xff]  ;;  %s379_s20 = scalar_lea.vmem %s2316_s0, %s1444_s29  ;;  %v454_v19 = vld [vmem:[%s2298_s5 + $0x10] sm:$0xff]  ;;  %468 = vmatpush.msra.mxu2 %v455_v18  ;;  %v453_v20 = vld [vmem:[%s2298_s5 + $0x8] sm:$0xff]  ;;  %s1548_s28 = sshra.s32 %s1226_s15, 4  ;;  %s1549_s28 = int_to_ptr.hbm [resolvable:$true] %s1548_s28 }
  0x1f   : > { %415 = vmatpush.msra.mxu0 %v393_v4  ;;  %v391_v8 = vld [vmem:[%s2314_s3] sm:$0xff]  ;;  %v384_v11 = vld [vmem:[%s379_s20 + $0x8] sm:$0xff]  ;;  %v1399_v23 = vld [vmem:[%s2297_s4 + $0x38] sm:$0xff]  ;;  %s1550_s29 = scalar_lea.hbm %s1549_s28, 16  ;;  %p1555_p0 = scmp.lt.s32.totalorder %s1549_s28, %s2302_s9 }
  0x20   : > { %443 = vmatpush.msra.mxu1 %v426_v3  ;;  %v383_v9 = vld [vmem:[%s379_s20] sm:$0xff]  ;;  %v1760_v13 = vadd.f32 %v386_v12, %v384_v11  ;;  %s382_s20 = scalar_lea.vmem %s2317_s1, %s1730_s18  ;;  %469 = vmatpush.msra.mxu2 %v454_v19  ;;  %v1398_v24 = vld [vmem:[%s2297_s4 + $0x30] sm:$0xff]  ;;  %v1397_v25 = vld [vmem:[%s2297_s4 + $0x28] sm:$0xff]  ;;  %s1206_s18 = scalar_lea.sflag [#allocation3], %s1833_s27 }
  0x21   : > { %416 = vmatpush.msra.mxu0 %v392_v5  ;;  %v1751_v10 = vadd.f32 %v385_v7, %v383_v9  ;;  %v452_v21 = vld [vmem:[%s2298_s5] sm:$0xff]  ;;  %v1393_v39 = vld [vmem:[%s2314_s3 + $0x38] sm:$0xff]  ;;  %v1392_v40 = vld [vmem:[%s2314_s3 + $0x30] sm:$0xff]  ;;  %p1551_p11 = scmp.ne.s32.totalorder %s1549_s28, %s1550_s29 }
  0x22   : > { %444 = vmatpush.msra.mxu1 %v425_v6  ;;  %470 = vmatpush.msra.mxu2 %v453_v20  ;;  %v389_v22 = vld [vmem:[%s382_s20] sm:$0x1]  ;;  %v1391_v41 = vld [vmem:[%s2314_s3 + $0x28] sm:$0xff]  ;;  %v1405_v58 = vld [vmem:[%s2298_s5 + $0x38] sm:$0xff]  ;;  %s1554_s20 = scalar_lea.hbm %s2302_s9, 32 }
  0x23   : > { %417 = vmatpush.msra.mxu0 %v391_v8  ;;  %1380 = vmatmul.msk.f32.vlgmr.msra.gmra.mxu1 %vm395_vm0, %v1751_v10  ;;  %vm390_vm2 = vcmp.ne.s32.totalorder %v389_v22, 0  ;;  %v1396_v28 = vld [vmem:[%s2297_s4 + $0x20] sm:$0xff]  ;;  %v1404_v59 = vld [vmem:[%s2298_s5 + $0x30] sm:$0xff]  ;;  %v1403_v60 = vld [vmem:[%s2298_s5 + $0x28] sm:$0xff]  ;;  %p1552_p12 = pnand %p1551_p11, %p1706_p5  ;;  %p1556_p1 = scmp.lt.s32.totalorder %s1554_s20, %s1550_s29 }
  0x24   : > { %1378 = vmatmul.msk.f32.vlgmr.msra.gmra.mxu0 %vm395_vm0, %v1751_v10  ;;  %471 = vmatpush.msra.mxu2 %v452_v21  ;;  %v517_v27 = vsel %vm390_vm2, 1, %v1602_v26  ;;  %v1390_v42 = vld [vmem:[%s2314_s3 + $0x20] sm:$0xff]  ;;  %v583_v1 = vld [vmem:[%s2299_s6 + $0x38] sm:$0xff]  ;;  %v582_v2 = vld [vmem:[%s2299_s6 + $0x30] sm:$0xff] }
  0x25   : > { %1382 = vmatmul.msk.f32.vlgmr.msra.gmra.mxu2 %vm395_vm0, %v1751_v10  ;;  %v518_v29 = vperm.slane %v517_v27, 0  ;;  %601 = vmatpush.msrb.mxu1 %v1393_v39  ;;  %v1402_v61 = vld [vmem:[%s2298_s5 + $0x20] sm:$0xff]  ;;  %v581_v3 = vld [vmem:[%s2299_s6 + $0x28] sm:$0xff]  ;;  %v579_v7 = vld [vmem:[%s2299_s6 + $0x18] sm:$0xff]  ;;  %p1553_p13 = pneg %p1552_p12  ;;  %p1557_p2 = por %p1556_p1, %p1555_p0 }
  0x26   : > { %629 = vmatpush.msrb.mxu2 %v1399_v23  ;;  %v580_v4 = vld [vmem:[%s2299_s6 + $0x20] sm:$0xff]  ;;  %v578_v8 = vld [vmem:[%s2299_s6 + $0x10] sm:$0xff]  ;;  %v577_v9 = vld [vmem:[%s2299_s6 + $0x8] sm:$0xff] }
  0x27   : > { %vm1802_vm3 = vcmp.eq.s32.totalorder %v518_v29, 1  ;;  %602 = vmatpush.msrb.mxu1 %v1392_v40  ;;  %v1423_v31 = vld [vmem:[%s2299_s6 + $0x78] sm:$0xff]  ;;  %v1421_v39 = vld [vmem:[%s2299_s6 + $0x68] sm:$0xff]  ;;  %v1420_v40 = vld [vmem:[%s2299_s6 + $0x60] sm:$0xff]  ;;  %p1558_p3 = pnand %p1557_p2, %p1553_p13 }
  0x28   : > { %630 = vmatpush.msrb.mxu2 %v1398_v24 }
  0x29   : > { %603 = vmatpush.msrb.mxu1 %v1391_v41  ;;  %v1419_v41 = vld [vmem:[%s2299_s6 + $0x58] sm:$0xff] }
  0x2a   : > { %631 = vmatpush.msrb.mxu2 %v1397_v25 }
  0x2b   : > { %1381 = vmatmul.msk.f32.gmra.mxu1 %vm395_vm0, %v1760_v13 }
  0x2c   : > { %1379 = vmatmul.msk.f32.gmra.mxu0 %vm395_vm0, %v1760_v13  ;;  %632 = vmatpush.msrb.mxu2 %v1396_v28 }
  0x2d   : > { %1383 = vmatmul.msk.f32.gmra.mxu2 %vm395_vm0, %v1760_v13  ;;  %604 = vmatpush.msrb.mxu1 %v1390_v42  ;;  %v1418_v42 = vld [vmem:[%s2299_s6 + $0x50] sm:$0xff] }
  0x2e   : > { %784 = vmatpush.msra.mxu2 %v1423_v31 }
  0x33   : > { %1394 = vmatmul.msk.f32.vlgmr.msrb.gmra.mxu1 %vm395_vm0, %v1751_v10 }
  0x35   : > { %1400 = vmatmul.msk.f32.vlgmr.msrb.gmra.mxu2 %vm395_vm0, %v1751_v10 }
  0x3b   : > { %1395 = vmatmul.msk.f32.gmra.mxu1 %vm395_vm0, %v1760_v13 }
  0x3d   : > { %1401 = vmatmul.msk.f32.gmra.mxu2 %vm395_vm0, %v1760_v13 }
  0xa0   : > { %v446_v14 = vpop.f32.mrf.mxu1 }
  0xa1   : > { %v419_v16 = vpop.f32.mrf.mxu0 }
  0xa8   : > { %v449_v15 = vpop.f32.mrf.mxu1  ;;  %v473_v44 = vpop.f32.mrf.mxu2 }
  0xa9   : > { %1384 = vmatpush.xpose.msk.msra.mxu3 %vm479_vm1, %v449_v15  ;;  %v422_v17 = vpop.f32.mrf.mxu0 }
  0xad   : > { %1385 = vmatpush.xpose.msk.msra.mxu3 %vm479_vm1, %v446_v14  ;;  %v576_v14 = vld [vmem:[%s2299_s6] sm:$0xff] }
  0xb0   : > { %1386 = vmatmul.msk.f32.vlgmr.msra.gmra.mxu3 %vm479_vm1, %v419_v16  ;;  %v476_v48 = vpop.f32.mrf.mxu2  ;;  %v606_v11 = vpop.f32.mrf.mxu1 }
  0xb1   : > { %567 = vmatpush.msrb.mxu0 %v476_v48  ;;  %657 = vmatpush.msrb.mxu3 %v1405_v58 }
  0xb3   : > { %568 = vmatpush.msrb.mxu0 %v473_v44  ;;  %658 = vmatpush.msrb.mxu3 %v1404_v59  ;;  %v1416_v44 = vld [vmem:[%s2299_s6 + $0x40] sm:$0xff] }
  0xb5   : > { %659 = vmatpush.msrb.mxu3 %v1403_v60 }
  0xb7   : > { %660 = vmatpush.msrb.mxu3 %v1402_v61 }
  0xb8   : > { %1387 = vmatmul.msk.f32.gmra.mxu3 %vm479_vm1, %v422_v17  ;;  %v634_v53 = vpop.f32.mrf.mxu2  ;;  %v609_v12 = vpop.f32.mrf.mxu1 }
  0xb9   : > { %813 = vmatpush.msra.mxu3 %v583_v1 }
  0xbb   : > { %814 = vmatpush.msra.mxu3 %v582_v2 }
  0xbd   : > { %815 = vmatpush.msra.mxu3 %v581_v3 }
  0xbf   : > { %816 = vmatpush.msra.mxu3 %v580_v4 }
  0xc0   : > { %v637_v56 = vpop.f32.mrf.mxu2  ;;  %1406 = vmatmul.msk.f32.vlgmr.msrb.gmra.mxu3 %vm395_vm0, %v1751_v10 }
  0xc1   : > { %1408 = vmatpush.xpose.msk.msra.mxu0 %vm479_vm1, %v637_v56  ;;  %817 = vmatpush.msra.mxu3 %v579_v7 }
  0xc3   : > { %818 = vmatpush.msra.mxu3 %v578_v8 }
  0xc5   : > { %1409 = vmatpush.xpose.msk.msra.mxu0 %vm479_vm1, %v634_v53  ;;  %819 = vmatpush.msra.mxu3 %v577_v9 }
  0xc7   : > { %820 = vmatpush.msra.mxu3 %v576_v14 }
  0xc8   : > { %1407 = vmatmul.msk.f32.gmra.mxu3 %vm395_vm0, %v1760_v13 }
 0x133   : > { %v509_v30 = vpop.f32.mrf.mxu3 }
 0x134   : > { %v515_v32 = vmul.f32 0.125, %v509_v30 }
 0x136   : > { %v520_v33 = vsel %vm1802_vm3, -1e+09, %v515_v32 }
 0x137   : > { %v523_v34 = vsel %vm522_vm4, %v520_v33, -inf }
 0x138   : > { %524 = vmax.xlane.f32.xlu0 %v523_v34 }
 0x13b   : > { %v512_v35 = vpop.f32.mrf.mxu3 }
 0x13c   : > { %v516_v36 = vmul.f32 0.125, %v512_v35 }
 0x13e   : > { %v521_v37 = vsel %vm1802_vm3, -1e+09, %v516_v36 }
 0x13f   : > { %v526_v38 = vsel %vm522_vm4, %v521_v37, -inf }
 0x140   : > { %527 = vmax.xlane.f32.xlu0 %v526_v38  ;;  %v1422_v38 = vld [vmem:[%s2299_s6 + $0x70] sm:$0xff] }
 0x141   : > { %785 = vmatpush.msra.mxu2 %v1422_v38  ;;  %v1033_v38 = vld [vmem:[%s2301_s8 + $0xf0] sm:$0xff] }
 0x143   : > { %v662_v16 = vpop.f32.mrf.mxu3  ;;  %786 = vmatpush.msra.mxu2 %v1421_v39  ;;  %v1016_v39 = vld [vmem:[%s2301_s8 + $0x68] sm:$0xff] }
 0x145   : > { %787 = vmatpush.msra.mxu2 %v1420_v40  ;;  %v1032_v40 = vld [vmem:[%s2301_s8 + $0xe8] sm:$0xff] }
 0x147   : > { %788 = vmatpush.msra.mxu2 %v1419_v41  ;;  %v1050_v41 = vld [vmem:[%s2301_s8 + $0x178] sm:$0xff] }
 0x149   : > { %789 = vmatpush.msra.mxu2 %v1418_v42  ;;  %v1015_v42 = vld [vmem:[%s2301_s8 + $0x60] sm:$0xff] }
 0x14b   : > { %v665_v18 = vpop.f32.mrf.mxu3 }
 0x14c   : > { %752 = vmatpush.msra.mxu1 %v665_v18  ;;  %v893_v18 = vld [vmem:[%s2300_s7 + $0x60] sm:$0xff] }
 0x14e   : > { %753 = vmatpush.msra.mxu1 %v662_v16  ;;  %v895_v16 = vld [vmem:[%s2300_s7 + $0x70] sm:$0xff] }
 0x1ab   : > { %v525_v43 = vpop.xlane.xlu0 %524 }
 0x1ac   : > { %v529_v45 = vsub.f32 %v520_v33, %v525_v43  ;;  %v1417_v43 = vld [vmem:[%s2299_s6 + $0x48] sm:$0xff] }
 0x1ad   : > { %790 = vmatpush.msra.mxu2 %v1417_v43  ;;  %v1066_v43 = vld [vmem:[%s2301_s8 + $0x1f8] sm:$0xff] }
 0x1ae   : > { %v531_v46 = vmul.f32 1.442695, %v529_v45 }
 0x1af   : > { %791 = vmatpush.msra.mxu2 %v1416_v44  ;;  %v1031_v44 = vld [vmem:[%s2301_s8 + $0xe0] sm:$0xff] }
 0x1b0   : > { %1508 = vpow2.f32 %v531_v46 }
 0x1b1   : > { %961 = vmatpush.msrb.mxu2 %v895_v16  ;;  %v1009_v16 = vld [vmem:[%s2301_s8 + $0x30] sm:$0xff] }
 0x1b3   : > { %v528_v47 = vpop.xlane.xlu0 %527 }
 0x1b4   : > { %v530_v49 = vsub.f32 %v521_v37, %v528_v47 }
 0x1b6   : > { %v1509_v50 = vpop.eup %1508  ;;  %v533_v51 = vmul.f32 1.442695, %v530_v49 }
 0x1b7   : > { %v535_v52 = vsel %vm522_vm4, %v1509_v50, 0.0 }
 0x1b8   : > { %1510 = vpow2.f32 %v533_v51  ;;  %536 = vadd.xlane.f32.xlu1 %v535_v52 }
 0x1be   : > { %v1511_v54 = vpop.eup %1510 }
 0x1bf   : > { %v538_v55 = vsel %vm522_vm4, %v1511_v54, 0.0 }
 0x1c0   : > { %539 = vadd.xlane.f32.xlu1 %v538_v55 }
 0x22b   : > { %v537_v57 = vpop.xlane.xlu1 %536 }
 0x22c   : > { %1512 = vrcp.f32 %v537_v57 }
 0x232   : > { %v1513_v62 = vpop.eup %1512 }
 0x233   : > { %v540_v63 = vpop.xlane.xlu1 %539  ;;  %v543_v0 = vmul.f32 %v1513_v62, %v1509_v50 }
 0x234   : > { %1514 = vrcp.f32 %v540_v63  ;;  %v1603_v63 = vmov 32.0  }
 0x235   : > { %545 = vst.msk [vmem:[%s1855_s26] sm:$0xff] %vm522_vm4, %v543_v0  ;;  %1388 = vmatmul.msk.f32.vlgmr.msrb.gmra.mxu0 %vm522_vm4, %v543_v0 }
 0x236   : > { %915 = vmatpush.msrb.mxu0 %v893_v18 }
 0x23a   : > { %v1515_v5 = vpop.eup %1514 }
 0x23b   : > { %v544_v6 = vmul.f32 %v1515_v5, %v1511_v54 }
 0x23d   : > { %546 = vst.msk [vmem:[%s1855_s26 + $0x8] sm:$0xff] %vm522_vm4, %v544_v6  ;;  %1389 = vmatmul.msk.f32.gmra.mxu0 %vm522_vm4, %v544_v6 }
 0x245   : > { %1410 = vmatmul.msk.f32.vlgmr.msra.gmra.mxu0 %vm479_vm1, %v606_v11 }
 0x24d   : > { %1411 = vmatmul.msk.f32.gmra.mxu0 %vm479_vm1, %v609_v12 }
 0x2b2   : > { %v570_v15 = vpop.f32.mrf.mxu0 }
 0x2b3   : > { %1426 = vmatmul.msk.f32.vlgmr.msra.gmra.mxu3 %vm479_vm1, %v570_v15 }
 0x2ba   : > { %v573_v17 = vpop.f32.mrf.mxu0 }
 0x2bb   : > { %1427 = vmatmul.msk.f32.gmra.mxu3 %vm479_vm1, %v573_v17  ;;  %v896_v17 = vld [vmem:[%s2300_s7 + $0x78] sm:$0xff] }
 0x2bc   : > { %984 = vmatpush.msrb.mxu3 %v896_v17  ;;  %v1025_v17 = vld [vmem:[%s2301_s8 + $0xb0] sm:$0xff] }
 0x2c2   : > { %v697_v19 = vpop.f32.mrf.mxu0 }
 0x2c3   : > { %v703_v20 = vmul.f32 0.125, %v697_v19  ;;  %v894_v19 = vld [vmem:[%s2300_s7 + $0x68] sm:$0xff] }
 0x2c4   : > { %938 = vmatpush.msrb.mxu1 %v894_v19  ;;  %v1042_v19 = vld [vmem:[%s2301_s8 + $0x138] sm:$0xff] }
 0x2c5   : > { %v705_v21 = vsel %vm1802_vm3, -1e+09, %v703_v20  ;;  %v891_v20 = vld [vmem:[%s2300_s7 + $0x50] sm:$0xff] }
 0x2c6   : > { %v707_v22 = vsel %vm522_vm4, %v705_v21, -inf  ;;  %962 = vmatpush.msrb.mxu2 %v891_v20  ;;  %v1058_v20 = vld [vmem:[%s2301_s8 + $0x1b8] sm:$0xff] }
 0x2c7   : > { %708 = vmax.xlane.f32.xlu2 %v707_v22  ;;  %v889_v22 = vld [vmem:[%s2300_s7 + $0x40] sm:$0xff] }
 0x2c8   : > { %916 = vmatpush.msrb.mxu0 %v889_v22 }
 0x2ca   : > { %v700_v23 = vpop.f32.mrf.mxu0 }
 0x2cb   : > { %v704_v24 = vmul.f32 0.125, %v700_v23  ;;  %v890_v23 = vld [vmem:[%s2300_s7 + $0x48] sm:$0xff] }
 0x2cc   : > { %939 = vmatpush.msrb.mxu1 %v890_v23  ;;  %v1008_v23 = vld [vmem:[%s2301_s8 + $0x28] sm:$0xff] }
 0x2cd   : > { %v706_v25 = vsel %vm1802_vm3, -1e+09, %v704_v24  ;;  %v887_v24 = vld [vmem:[%s2300_s7 + $0x30] sm:$0xff] }
 0x2ce   : > { %v710_v26 = vsel %vm522_vm4, %v706_v25, -inf  ;;  %963 = vmatpush.msrb.mxu2 %v887_v24  ;;  %v1024_v24 = vld [vmem:[%s2301_s8 + $0xa8] sm:$0xff] }
 0x2cf   : > { %711 = vmax.xlane.f32.xlu2 %v710_v26  ;;  %v885_v26 = vld [vmem:[%s2300_s7 + $0x20] sm:$0xff] }
 0x2d0   : > { %917 = vmatpush.msrb.mxu0 %v885_v26  ;;  %v1057_v26 = vld [vmem:[%s2301_s8 + $0x1b0] sm:$0xff] }
 0x336   : > { %v822_v53 = vpop.f32.mrf.mxu3 }
 0x33a   : > { %v709_v27 = vpop.xlane.xlu2 %708 }
 0x33b   : > { %v713_v28 = vsub.f32 %v705_v21, %v709_v27  ;;  %v892_v21 = vld [vmem:[%s2300_s7 + $0x58] sm:$0xff]  ;;  %v886_v27 = vld [vmem:[%s2300_s7 + $0x28] sm:$0xff] }
 0x33c   : > { %985 = vmatpush.msrb.mxu3 %v892_v21  ;;  %940 = vmatpush.msrb.mxu1 %v886_v27 }
 0x33d   : > { %v715_v29 = vmul.f32 1.442695, %v713_v28  ;;  %v883_v28 = vld [vmem:[%s2300_s7 + $0x10] sm:$0xff] }
 0x33e   : > { %v825_v58 = vpop.f32.mrf.mxu3  ;;  %964 = vmatpush.msrb.mxu2 %v883_v28 }
 0x33f   : > { %1516 = vpow2.f32 %v715_v29  ;;  %v884_v29 = vld [vmem:[%s2300_s7 + $0x18] sm:$0xff] }
 0x342   : > { %v712_v30 = vpop.xlane.xlu2 %711 }
 0x343   : > { %v714_v32 = vsub.f32 %v706_v25, %v712_v30  ;;  %v888_v25 = vld [vmem:[%s2300_s7 + $0x38] sm:$0xff]  ;;  %v881_v30 = vld [vmem:[%s2300_s7] sm:$0xff] }
 0x344   : > { %986 = vmatpush.msrb.mxu3 %v888_v25  ;;  %918 = vmatpush.msrb.mxu0 %v881_v30  ;;  %v1041_v25 = vld [vmem:[%s2301_s8 + $0x130] sm:$0xff] }
 0x345   : > { %v1517_v33 = vpop.eup %1516  ;;  %v717_v34 = vmul.f32 1.442695, %v714_v32  ;;  %v882_v32 = vld [vmem:[%s2300_s7 + $0x8] sm:$0xff] }
 0x346   : > { %v719_v35 = vsel %vm522_vm4, %v1517_v33, 0.0  ;;  %987 = vmatpush.msrb.mxu3 %v884_v29  ;;  %941 = vmatpush.msrb.mxu1 %v882_v32  ;;  %v1007_v32 = vld [vmem:[%s2301_s8 + $0x20] sm:$0xff] }
 0x347   : > { %1518 = vpow2.f32 %v717_v34  ;;  %720 = vadd.xlane.f32.xlu0 %v719_v35  ;;  %v1018_v35 = vld [vmem:[%s2301_s8 + $0x78] sm:$0xff] }
 0x348   : > { %1067 = vmatpush.msra.mxu0 %v1018_v35  ;;  %1136 = vmatpush.msra.mxu3 %v1066_v43  ;;  %v1039_v43 = vld [vmem:[%s2301_s8 + $0x120] sm:$0xff] }
 0x34d   : > { %v1519_v36 = vpop.eup %1518 }
 0x34e   : > { %v722_v37 = vsel %vm522_vm4, %v1519_v36, 0.0 }
 0x34f   : > { %723 = vadd.xlane.f32.xlu1 %v722_v37  ;;  %v1017_v37 = vld [vmem:[%s2301_s8 + $0x70] sm:$0xff] }
 0x350   : > { %1068 = vmatpush.msra.mxu0 %v1017_v37  ;;  %v1022_v37 = vld [vmem:[%s2301_s8 + $0x98] sm:$0xff] }
 0x352   : > { %1069 = vmatpush.msra.mxu0 %v1016_v39  ;;  %v1021_v39 = vld [vmem:[%s2301_s8 + $0x90] sm:$0xff] }
 0x354   : > { %1070 = vmatpush.msra.mxu0 %v1015_v42  ;;  %v1004_v42 = vld [vmem:[%s2301_s8 + $0x8] sm:$0xff] }
 0x3ba   : > { %v721_v45 = vpop.xlane.xlu0 %720 }
 0x3bb   : > { %1520 = vrcp.f32 %v721_v45  ;;  %v1049_v45 = vld [vmem:[%s2301_s8 + $0x170] sm:$0xff] }
 0x3c1   : > { %v1521_v46 = vpop.eup %1520 }
 0x3c2   : > { %v727_v47 = vmul.f32 %v1521_v46, %v1517_v33  ;;  %v724_v48 = vpop.xlane.xlu1 %723  ;;  %v1065_v46 = vld [vmem:[%s2301_s8 + $0x1f0] sm:$0xff] }
 0x3c3   : > { %1522 = vrcp.f32 %v724_v48  ;;  %v1064_v48 = vld [vmem:[%s2301_s8 + $0x1e8] sm:$0xff]  ;;  %1137 = vmatpush.msra.mxu3 %v1065_v46  ;;  %v1019_v46 = vld [vmem:[%s2301_s8 + $0x80] sm:$0xff] }
 0x3c4   : > { %1412 = vst.msk [vmem:[%s1855_s26 + $0x10] sm:$0xff] %vm522_vm4, %v727_v47  ;;  %1414 = vmatmul.msk.f32.vlgmr.msra.gmra.mxu1 %vm522_vm4, %v727_v47  ;;  %1524 = vrcp.f32 %v1603_v63  ;;  %v1048_v47 = vld [vmem:[%s2301_s8 + $0x168] sm:$0xff] }
 0x3c5   : > { %1138 = vmatpush.msra.mxu3 %v1064_v48  ;;  %v1028_v63 = vld [vmem:[%s2301_s8 + $0xc8] sm:$0xff]  ;;  %v1054_v48 = vld [vmem:[%s2301_s8 + $0x198] sm:$0xff] }
 0x3c9   : > { %v1523_v49 = vpop.eup %1522 }
 0x3ca   : > { %v728_v50 = vmul.f32 %v1523_v49, %v1519_v36  ;;  %v1525_v0 = vpop.eup %1524  ;;  %v1034_v36 = vld [vmem:[%s2301_s8 + $0xf8] sm:$0xff] }
 0x3cb   : > { %v837_v1 = vmul.f32 32.0, %v1525_v0  ;;  %vm841_vm5 = vweird.f32 %v1525_v0  ;;  %1090 = vmatpush.msra.mxu1 %v1034_v36  ;;  %v1006_v36 = vld [vmem:[%s2301_s8 + $0x18] sm:$0xff] }
 0x3cc   : > { %1413 = vst.msk [vmem:[%s1855_s26 + $0x18] sm:$0xff] %vm522_vm4, %v728_v50  ;;  %1415 = vmatmul.msk.f32.gmra.mxu1 %vm522_vm4, %v728_v50  ;;  %v1014_v50 = vld [vmem:[%s2301_s8 + $0x58] sm:$0xff] }
 0x3cd   : > { %v838_v2 = vsub.f32 1.0, %v837_v1  ;;  %1091 = vmatpush.msra.mxu1 %v1033_v38  ;;  %1071 = vmatpush.msra.mxu0 %v1014_v50  ;;  %v1061_v1 = vld [vmem:[%s2301_s8 + $0x1d0] sm:$0xff] }
 0x3ce   : > { %v1005_v38 = vld [vmem:[%s2301_s8 + $0x10] sm:$0xff] }
 0x3cf   : > { %v839_v3 = vmul.f32 %v1525_v0, %v838_v2  ;;  %1092 = vmatpush.msra.mxu1 %v1032_v40  ;;  %v1053_v50 = vld [vmem:[%s2301_s8 + $0x190] sm:$0xff] }
 0x3d1   : > { %v840_v4 = vadd.f32 %v1525_v0, %v839_v3  ;;  %1093 = vmatpush.msra.mxu1 %v1031_v44  ;;  %v1011_v3 = vld [vmem:[%s2301_s8 + $0x40] sm:$0xff] }
 0x3d2   : > { %v1055_v44 = vld [vmem:[%s2301_s8 + $0x1a0] sm:$0xff] }
 0x441   : > { %v755_v51 = vpop.f32.mrf.mxu1 }
 0x442   : > { %1424 = vmatmul.msk.f32.vlgmr.msra.gmra.mxu2 %vm479_vm1, %v755_v51  ;;  %v1030_v51 = vld [vmem:[%s2301_s8 + $0xd8] sm:$0xff] }
 0x443   : > { %1113 = vmatpush.msra.mxu2 %v1050_v41  ;;  %1094 = vmatpush.msra.mxu1 %v1030_v51  ;;  %v1036_v51 = vld [vmem:[%s2301_s8 + $0x108] sm:$0xff] }
 0x445   : > { %1114 = vmatpush.msra.mxu2 %v1049_v45  ;;  %v1003_v45 = vld [vmem:[%s2301_s8] sm:$0xff] }
 0x447   : > { %1115 = vmatpush.msra.mxu2 %v1048_v47  ;;  %v1038_v47 = vld [vmem:[%s2301_s8 + $0x118] sm:$0xff] }
 0x449   : > { %v758_v52 = vpop.f32.mrf.mxu1 }
 0x44a   : > { %1425 = vmatmul.msk.f32.gmra.mxu2 %vm479_vm1, %v758_v52 }
 0x4c5   : > { %v793_v54 = vpop.f32.mrf.mxu2 }
 0x4c6   : > { %v823_v55 = vadd.f32 %v822_v53, %v793_v54  ;;  %v1047_v53 = vld [vmem:[%s2301_s8 + $0x160] sm:$0xff] }
 0x4c7   : > { %v1063_v54 = vld [vmem:[%s2301_s8 + $0x1e0] sm:$0xff]  ;;  %1116 = vmatpush.msra.mxu2 %v1047_v53 }
 0x4c8   : > { %v828_v56 = vadd.f32 %v823_v55, %v1751_v10  ;;  %v1936_v10 = vsel %vm841_vm5, %v1525_v0, %v840_v4  ;;  %v1013_v55 = vld [vmem:[%s2301_s8 + $0x50] sm:$0xff]  ;;  %1139 = vmatpush.msra.mxu3 %v1063_v54  ;;  %v1027_v4 = vld [vmem:[%s2301_s8 + $0xc0] sm:$0xff] }
 0x4c9   : > { %1072 = vmatpush.msra.mxu0 %v1013_v55  ;;  %v1045_v0 = vld [vmem:[%s2301_s8 + $0x150] sm:$0xff]  ;;  %v1035_v53 = vld [vmem:[%s2301_s8 + $0x100] sm:$0xff] }
 0x4ca   : > { %v830_v57 = vsel %vm395_vm0, %v828_v56, 0.0  ;;  %v1051_v54 = vld [vmem:[%s2301_s8 + $0x180] sm:$0xff] }
 0x4cb   : > { %831 = vadd.xlane.f32.xlu2 %v830_v57 }
 0x4cd   : > { %v796_v59 = vpop.f32.mrf.mxu2 }
 0x4ce   : > { %v826_v60 = vadd.f32 %v825_v58, %v796_v59  ;;  %v1046_v59 = vld [vmem:[%s2301_s8 + $0x158] sm:$0xff] }
 0x4cf   : > { %1117 = vmatpush.msra.mxu2 %v1046_v59 }
 0x4d0   : > { %v829_v61 = vadd.f32 %v826_v60, %v1760_v13  ;;  %v1062_v60 = vld [vmem:[%s2301_s8 + $0x1d8] sm:$0xff] }
 0x4d1   : > { %1140 = vmatpush.msra.mxu3 %v1062_v60  ;;  %1118 = vmatpush.msra.mxu2 %v1045_v0 }
 0x4d2   : > { %v833_v62 = vsel %vm395_vm0, %v829_v61, 0.0 }
 0x4d3   : > { %834 = vadd.xlane.f32.xlu0 %v833_v62  ;;  %v1012_v62 = vld [vmem:[%s2301_s8 + $0x48] sm:$0xff]  ;;  %1141 = vmatpush.msra.mxu3 %v1061_v1 }
 0x4d4   : > { %1073 = vmatpush.msra.mxu0 %v1012_v62 }
 0x4d6   : > { %1074 = vmatpush.msra.mxu0 %v1011_v3 }
 0x53e   : > { %v832_v5 = vpop.xlane.xlu2 %831 }
 0x53f   : > { %v843_v6 = vmul.f32 %v1936_v10, %v832_v5  ;;  %v1044_v5 = vld [vmem:[%s2301_s8 + $0x148] sm:$0xff] }
 0x540   : > { %1119 = vmatpush.msra.mxu2 %v1044_v5 }
 0x541   : > { %v1939_v7 = vsub.f32 %v828_v56, %v843_v6  ;;  %v1029_v56 = vld [vmem:[%s2301_s8 + $0xd0] sm:$0xff]  ;;  %v1060_v6 = vld [vmem:[%s2301_s8 + $0x1c8] sm:$0xff] }
 0x542   : > { %1095 = vmatpush.msra.mxu1 %v1029_v56  ;;  %1142 = vmatpush.msra.mxu3 %v1060_v6 }
 0x543   : > { %v847_v13 = vmul.f32 %v1939_v7, %v1939_v7 }
 0x544   : > { %1096 = vmatpush.msra.mxu1 %v1028_v63 }
 0x545   : > { %v849_v8 = vsel %vm395_vm0, %v847_v13, 0.0 }
 0x546   : > { %v835_v9 = vpop.xlane.xlu0 %834  ;;  %850 = vadd.xlane.f32.xlu1 %v849_v8  ;;  %v1010_v8 = vld [vmem:[%s2301_s8 + $0x38] sm:$0xff]  ;;  %1097 = vmatpush.msra.mxu1 %v1027_v4 }
 0x547   : > { %v844_v11 = vmul.f32 %v1936_v10, %v835_v9  ;;  %v1026_v9 = vld [vmem:[%s2301_s8 + $0xb8] sm:$0xff]  ;;  %1075 = vmatpush.msra.mxu0 %v1010_v8 }
 0x548   : > { %1098 = vmatpush.msra.mxu1 %v1026_v9 }
 0x549   : > { %v1945_v12 = vsub.f32 %v829_v61, %v844_v11  ;;  %v1043_v11 = vld [vmem:[%s2301_s8 + $0x140] sm:$0xff]  ;;  %1076 = vmatpush.msra.mxu0 %v1009_v16 }
 0x54a   : > { %1120 = vmatpush.msra.mxu2 %v1043_v11  ;;  %1099 = vmatpush.msra.mxu1 %v1025_v17 }
 0x54b   : > { %v848_v14 = vmul.f32 %v1945_v12, %v1945_v12  ;;  %1077 = vmatpush.msra.mxu0 %v1008_v23 }
 0x54c   : > { %1121 = vmatpush.msra.mxu2 %v1042_v19  ;;  %1100 = vmatpush.msra.mxu1 %v1024_v24 }
 0x54d   : > { %v852_v15 = vsel %vm395_vm0, %v848_v14, 0.0  ;;  %v1059_v14 = vld [vmem:[%s2301_s8 + $0x1c0] sm:$0xff]  ;;  %1078 = vmatpush.msra.mxu0 %v1007_v32 }
 0x54e   : > { %853 = vadd.xlane.f32.xlu2 %v852_v15  ;;  %1143 = vmatpush.msra.mxu3 %v1059_v14 }
 0x54f   : > { %1122 = vmatpush.msra.mxu2 %v1041_v25  ;;  %1079 = vmatpush.msra.mxu0 %v1006_v36 }
 0x550   : > { %1144 = vmatpush.msra.mxu3 %v1058_v20 }
 0x551   : > { %1080 = vmatpush.msra.mxu0 %v1005_v38 }
 0x552   : > { %1145 = vmatpush.msra.mxu3 %v1057_v26 }
 0x553   : > { %1081 = vmatpush.msra.mxu0 %v1004_v42 }
 0x555   : > { %1082 = vmatpush.msra.mxu0 %v1003_v45 }
 0x5b9   : > { %v851_v33 = vpop.xlane.xlu1 %850 }
 0x5ba   : > { %v855_v34 = vmul.f32 %v851_v33, %v1936_v10  ;;  %v1023_v33 = vld [vmem:[%s2301_s8 + $0xa0] sm:$0xff] }
 0x5bb   : > { %1101 = vmatpush.msra.mxu1 %v1023_v33 }
 0x5bc   : > { %v2008_v31 = vadd.f32 1e-05, %v855_v34  ;;  %v1056_v34 = vld [vmem:[%s2301_s8 + $0x1a8] sm:$0xff] }
 0x5bd   : > { %1146 = vmatpush.msra.mxu3 %v1056_v34  ;;  %1102 = vmatpush.msra.mxu1 %v1022_v37 }
 0x5be   : > { %1526 = vrsqrt.f32 %v2008_v31  ;;  %vm865_vm7 = vweird.f32 %v2008_v31 }
 0x5bf   : > { %1103 = vmatpush.msra.mxu1 %v1021_v39  ;;  %1147 = vmatpush.msra.mxu3 %v1055_v44 }
 0x5c1   : > { %v854_v49 = vpop.xlane.xlu2 %853  ;;  %1148 = vmatpush.msra.mxu3 %v1054_v48 }
 0x5c2   : > { %v856_v52 = vmul.f32 %v854_v49, %v1936_v10  ;;  %v1037_v49 = vld [vmem:[%s2301_s8 + $0x110] sm:$0xff] }
 0x5c3   : > { %1149 = vmatpush.msra.mxu3 %v1053_v50 }
 0x5c4   : > { %v1527_v57 = vpop.eup %1526  ;;  %v2063_v58 = vadd.f32 1e-05, %v856_v52  ;;  %v1052_v52 = vld [vmem:[%s2301_s8 + $0x188] sm:$0xff] }
 0x5c5   : > { %v860_v61 = vmul.f32 %v1527_v57, %v2008_v31  ;;  %vm866_vm6 = vweird.f32 %v1527_v57  ;;  %1150 = vmatpush.msra.mxu3 %v1052_v52 }
 0x5c6   : > { %1528 = vrsqrt.f32 %v2063_v58  ;;  %vm867_vm8 = vmor %vm865_vm7, %vm866_vm6  ;;  %vm875_vm10 = vweird.f32 %v2063_v58 }
 0x5c7   : > { %v861_v2 = vmul.f32 %v1527_v57, %v860_v61  ;;  %1151 = vmatpush.msra.mxu3 %v1051_v54 }
 0x5c9   : > { %v862_v13 = vmul.f32 0.5, %v861_v2 }
 0x5cb   : > { %v863_v15 = vsub.f32 1.5, %v862_v13 }
 0x5cc   : > { %v1529_v18 = vpop.eup %1528 }
 0x5cd   : > { %v864_v21 = vmul.f32 %v1527_v57, %v863_v15  ;;  %v870_v22 = vmul.f32 %v1529_v18, %v2063_v58  ;;  %vm876_vm9 = vweird.f32 %v1529_v18 }
 0x5ce   : > { %vm877_vm11 = vmor %vm875_vm10, %vm876_vm9 }
 0x5cf   : > { %v868_v27 = vsel %vm867_vm8, %v1527_v57, %v864_v21  ;;  %v871_v28 = vmul.f32 %v1529_v18, %v870_v22 }
 0x5d0   : > { %v2137_v29 = vmul.f32 %v868_v27, %v1939_v7  ;;  %v1040_v7 = vld [vmem:[%s2301_s8 + $0x128] sm:$0xff] }
 0x5d1   : > { %v872_v30 = vmul.f32 0.5, %v871_v28  ;;  %1123 = vmatpush.msra.mxu2 %v1040_v7 }
 0x5d2   : > { %1428 = vmatmul.msk.f32.vlgmr.msrb.gmra.mxu0 %vm395_vm0, %v2137_v29  ;;  %1430 = vmatmul.msk.f32.vlgmr.msrb.gmra.mxu1 %vm395_vm0, %v2137_v29 }
 0x5d3   : > { %v873_v35 = vsub.f32 1.5, %v872_v30  ;;  %1432 = vmatmul.msk.f32.vlgmr.msrb.gmra.mxu2 %vm395_vm0, %v2137_v29  ;;  %1434 = vmatmul.msk.f32.vlgmr.msrb.gmra.mxu3 %vm395_vm0, %v2137_v29 }
 0x5d4   : > { %1124 = vmatpush.msra.mxu2 %v1039_v43 }
 0x5d5   : > { %v874_v31 = vmul.f32 %v1529_v18, %v873_v35 }
 0x5d6   : > { %1125 = vmatpush.msra.mxu2 %v1038_v47 }
 0x5d7   : > { %v878_v40 = vsel %vm877_vm11, %v1529_v18, %v874_v31 }
 0x5d8   : > { %v2173_v41 = vmul.f32 %v878_v40, %v1945_v12  ;;  %v1020_v12 = vld [vmem:[%s2301_s8 + $0x88] sm:$0xff]  ;;  %1126 = vmatpush.msra.mxu2 %v1037_v49 }
 0x5d9   : > { %1104 = vmatpush.msra.mxu1 %v1020_v12 }
 0x5da   : > { %1429 = vmatmul.msk.f32.gmra.mxu0 %vm395_vm0, %v2173_v41  ;;  %1431 = vmatmul.msk.f32.gmra.mxu1 %vm395_vm0, %v2173_v41 }
 0x5db   : > { %1433 = vmatmul.msk.f32.gmra.mxu2 %vm395_vm0, %v2173_v41  ;;  %1435 = vmatmul.msk.f32.gmra.mxu3 %vm395_vm0, %v2173_v41 }
 0x5dc   : > { %1105 = vmatpush.msra.mxu1 %v1019_v46  ;;  %1127 = vmatpush.msra.mxu2 %v1036_v51 }
 0x5de   : > { %1128 = vmatpush.msra.mxu2 %v1035_v53 }
 0x64f   : > { %v920_v55 = vpop.f32.mrf.mxu0  ;;  %v943_v56 = vpop.f32.mrf.mxu1 }
 0x650   : > { %v995_v57 = vmax.f32 %v920_v55, 0.0  ;;  %v996_v58 = vmax.f32 %v943_v56, 0.0 }
 0x652   : > { %1083 = vmatmul.f32.vlgmr.msra.gmra.mxu0 %v995_v57  ;;  %1106 = vmatmul.f32.vlgmr.msra.gmra.mxu1 %v996_v58 }
 0x656   : > { %v966_v59 = vpop.f32.mrf.mxu2  ;;  %v989_v60 = vpop.f32.mrf.mxu3 }
 0x657   : > { %v997_v61 = vmax.f32 %v966_v59, 0.0  ;;  %v998_v62 = vmax.f32 %v989_v60, 0.0  ;;  %v923_v63 = vpop.f32.mrf.mxu0  ;;  %v946_v0 = vpop.f32.mrf.mxu1 }
 0x658   : > { %v999_v1 = vmax.f32 %v923_v63, 0.0  ;;  %v1000_v2 = vmax.f32 %v946_v0, 0.0 }
 0x659   : > { %1129 = vmatmul.f32.vlgmr.msra.gmra.mxu2 %v997_v61  ;;  %1152 = vmatmul.f32.vlgmr.msra.gmra.mxu3 %v998_v62 }
 0x65a   : > { %1086 = vmatmul.f32.gmra.mxu0 %v999_v1  ;;  %1109 = vmatmul.f32.gmra.mxu1 %v1000_v2 }
 0x65e   : > { %v969_v3 = vpop.f32.mrf.mxu2  ;;  %v992_v4 = vpop.f32.mrf.mxu3 }
 0x65f   : > { %v1001_v5 = vmax.f32 %v969_v3, 0.0  ;;  %v1002_v6 = vmax.f32 %v992_v4, 0.0 }
 0x661   : > { %1132 = vmatmul.f32.gmra.mxu2 %v1001_v5  ;;  %1155 = vmatmul.f32.gmra.mxu3 %v1002_v6 }
 0x6cf   : > { %v1084_v13 = vpop.f32.mrf.mxu0  ;;  %v1107_v9 = vpop.f32.mrf.mxu1 }
 0x6d0   : > { %v1085_v8 = vadd.f32 %v1084_v13, %v2137_v29 }
 0x6d2   : > { %v1108_v11 = vadd.f32 %v1107_v9, %v1085_v8 }
 0x6d7   : > { %v1087_v14 = vpop.f32.mrf.mxu0  ;;  %v1110_v21 = vpop.f32.mrf.mxu1 }
 0x6d8   : > { %v1088_v18 = vadd.f32 %v1087_v14, %v2173_v41 }
 0x6da   : > { %v1111_v22 = vadd.f32 %v1110_v21, %v1088_v18 }
 0x6dc   : > { %v1130_v15 = vpop.f32.mrf.mxu2  ;;  %v1153_v16 = vpop.f32.mrf.mxu3 }
 0x6dd   : > { %v1131_v17 = vadd.f32 %v1130_v15, %v1108_v11 }
 0x6df   : > { %v1154_v19 = vadd.f32 %v1153_v16, %v1131_v17 }
 0x6e1   : > { %v1159_v20 = vsel %vm395_vm0, %v1154_v19, 0.0 }
 0x6e2   : > { %1160 = vadd.xlane.f32.xlu0 %v1159_v20 }
 0x6e4   : > { %v1133_v23 = vpop.f32.mrf.mxu2  ;;  %v1156_v25 = vpop.f32.mrf.mxu3 }
 0x6e5   : > { %v1134_v24 = vadd.f32 %v1133_v23, %v1111_v22 }
 0x6e7   : > { %v1157_v26 = vadd.f32 %v1156_v25, %v1134_v24 }
 0x6e9   : > { %v1162_v27 = vsel %vm395_vm0, %v1157_v26, 0.0 }
 0x6ea   : > { %1163 = vadd.xlane.f32.xlu1 %v1162_v27 }
 0x755   : > { %v1161_v28 = vpop.xlane.xlu0 %1160 }
 0x756   : > { %v1165_v29 = vmul.f32 %v1161_v28, %v1936_v10 }
 0x758   : > { %v1167_v30 = vsub.f32 %v1154_v19, %v1165_v29 }
 0x75a   : > { %v1169_v32 = vmul.f32 %v1167_v30, %v1167_v30 }
 0x75c   : > { %v1171_v33 = vsel %vm395_vm0, %v1169_v32, 0.0 }
 0x75d   : > { %1172 = vadd.xlane.f32.xlu2 %v1171_v33  ;;  %v1164_v7 = vpop.xlane.xlu1 %1163 }
 0x75e   : > { %v1166_v34 = vmul.f32 %v1164_v7, %v1936_v10 }
 0x760   : > { %v1168_v35 = vsub.f32 %v1157_v26, %v1166_v34 }
 0x762   : > { %v1170_v36 = vmul.f32 %v1168_v35, %v1168_v35 }
 0x764   : > { %v1174_v37 = vsel %vm395_vm0, %v1170_v36, 0.0 }
 0x765   : > { %1175 = vadd.xlane.f32.xlu0 %v1174_v37 }
 0x7d0   : > { %v1173_v31 = vpop.xlane.xlu2 %1172 }
 0x7d1   : > { %v1177_v38 = vmul.f32 %v1173_v31, %v1936_v10 }
 0x7d3   : > { %v1179_v39 = vadd.f32 1e-05, %v1177_v38 }
 0x7d5   : > { %1530 = vrsqrt.f32 %v1179_v39  ;;  %vm1187_vm13 = vweird.f32 %v1179_v39 }
 0x7d8   : > { %v1176_v40 = vpop.xlane.xlu0 %1175 }
 0x7d9   : > { %v1178_v41 = vmul.f32 %v1176_v40, %v1936_v10 }
 0x7db   : > { %v1531_v42 = vpop.eup %1530  ;;  %v1180_v12 = vadd.f32 1e-05, %v1178_v41 }
 0x7dc   : > { %v1182_v43 = vmul.f32 %v1531_v42, %v1179_v39  ;;  %vm1188_vm12 = vweird.f32 %v1531_v42 }
 0x7dd   : > { %1532 = vrsqrt.f32 %v1180_v12  ;;  %vm1189_vm14 = vmor %vm1187_vm13, %vm1188_vm12  ;;  %vm1197_vm1 = vweird.f32 %v1180_v12 }
 0x7de   : > { %v1183_v44 = vmul.f32 %v1531_v42, %v1182_v43 }
 0x7e0   : > { %v1184_v45 = vmul.f32 0.5, %v1183_v44 }
 0x7e2   : > { %v1185_v46 = vsub.f32 1.5, %v1184_v45 }
 0x7e3   : > { %v1533_v47 = vpop.eup %1532 }
 0x7e4   : > { %v1186_v48 = vmul.f32 %v1531_v42, %v1185_v46  ;;  %v1192_v49 = vmul.f32 %v1533_v47, %v1180_v12  ;;  %vm1198_vm15 = vweird.f32 %v1533_v47 }
 0x7e5   : > { %vm1199_vm2 = vmor %vm1197_vm1, %vm1198_vm15 }
 0x7e6   : > { %v1190_v50 = vsel %vm1189_vm14, %v1531_v42, %v1186_v48  ;;  %v1193_v51 = vmul.f32 %v1533_v47, %v1192_v49 }
 0x7e7   : > { %v1201_v52 = vmul.f32 %v1190_v50, %v1167_v30 }
 0x7e8   : > { %v1194_v10 = vmul.f32 0.5, %v1193_v51 }
 0x7e9   : > { %1203 = vst.msk [vmem:[%s367_s22] sm:$0xff] %vm395_vm0, %v1201_v52 }
 0x7ea   : > { %v1195_v53 = vsub.f32 1.5, %v1194_v10 }
 0x7ec   : > { %v1196_v54 = vmul.f32 %v1533_v47, %v1195_v53 }
 0x7ee   : > { %v1200_v55 = vsel %vm1199_vm2, %v1533_v47, %v1196_v54 }
 0x7ef   : > { %v1202_v56 = vmul.f32 %v1200_v55, %v1168_v35 }
 0x7f1   : > { %1204 = vst.msk [vmem:[%s367_s22 + $0x8] sm:$0xff] %vm395_vm0, %v1202_v56 }
 0x7f2   : > { %1561 = shalt.err (!%p1558_p3)
}
 0x7f3   : > { %s1604_s22 = smov 128   ;;  %s1605_s0 = smov 8  }
 0x7f4   : > { %1447 = dma.vmem_to_hbm [thread:$0]  (%p1706_p5), %s1224_s25, 256, %s1226_s15, %s1206_s18, %s1604_s22, %s1604_s22, %s1605_s0  }
 0x7f5   : > { %s1211_s1 = scalar_lea.sflag [#allocation5], %s1833_s27 }
 0x7f6   : > { %s2320_s2 = sshll.u32 %s1689_s17, 4  ;;  %s1250_s28 = sshll.u32 %s1855_s26, 4  ;;  %s1251_s28 = int_to_ptr.vmem [resolvable:$true] %s1250_s28 }
 0x7f7   : > { %s1239_s11 = scalar_lea.hbm %s2303_s10, %s2320_s2  ;;  %s1606_s0 = smov 256  }
 0x7f8   : > { %s1252_s29 = sshll.u32 %s1239_s11, 4  ;;  %1448 = sst [smem:[#allocation7]] (%p1706_p5), %s1606_s0  ;;  %s1253_s29 = int_to_ptr.hbm [resolvable:$true] %s1252_s29 }
 0x7f9   : > { %s1607_s17 = smov 512   ;;  %s1608_s3 = smov 2  }
 0x7fa   : > { %1449 = sst [smem:[#allocation7 + $0x1]] (%p1706_p5), %s1607_s17  ;;  %s1609_s27 = smov 128  }
 0x7fb   : > { %1450 = sst [smem:[#allocation7 + $0x2]] (%p1706_p5), %s1608_s3  ;;  %s1610_s2 = smov 8  }
 0x7fc   : > { %1451 = sst [smem:[#allocation7 + $0x3]] (%p1706_p5), %s1609_s27  ;;  %s1611_s26 = smov [#allocation6]  }
 0x7fd   : > { %1452 = sst [smem:[#allocation7 + $0x4]] (%p1706_p5), %s1609_s27  ;;  %s1612_s25 = smov 0  }
 0x7fe   : > { %1453 = sst [smem:[#allocation7 + $0x5]] (%p1706_p5), %s1610_s2 }
 0x7ff   : > { %1454 = dma.general (%p1706_p5), %s1251_s28, 512, %s1253_s29, %s1211_s1, %s1611_s26, [#allocation7], %s1612_s25, 0  }
 0x800 PF: > { %p1464_p4 = scmp.ge.s32.totalorder %s1600_s16, 2  ;;  %s1280_s15 = sand.u32 1, %s1588_s13  }
 0x801   : > { %s1281_s18 = scalar_lea.sflag [#allocation3], %s1280_s15 }
 0x802   : > { %p1458_p7 = pnand %p1464_p4, %p1710_p6 }
 0x804   : > { %p1459_p8 = pneg %p1458_p7 }
 0x806   : > { %1579 = dma.done.wait (%p1459_p8), %s1281_s18, 256  }
 0x807   : > { %1581 = vsyncadd (%p1459_p8), %s1281_s18, 4294967040  ;;  %s1291_s12 = scalar_lea.sflag [#allocation5], %s1280_s15 }
 0x808   : > { %1583 = dma.done.wait (%p1459_p8), %s1291_s12, 512  }
 0x809   : > { %1585 = vsyncadd (%p1459_p8), %s1291_s12, 4294966784  ;;  %s2321_s20 = sld [smem:[#allocation10_spill]]  ;;  %p24_p5 = scmp.ge.s32.totalorder %s1693_s19, 4  }
 0x80a   : > { %s2322_s15 = sld [smem:[#allocation11_spill]]  ;;  %s2323_s13 = smov %s1592_s14 }
 0x80b   : > { %s2325_s16 = smov %s1693_s19  ;;  %26 = sbr.rel (!%p24_p5) target bundleno = 10 (0xa), region = 121 }
 0x80f   : > { %s2324_s14 = smov %s2321_s20 }
 0x810   :  { %1297 = vsyncpa [#allocation3], 1 }
 0x811   :  { %1299 = vsyncpa [#allocation3 + $0x1], 1 }
 0x812   :  { %1300 = vsyncpa [#allocation5], 1 }
 0x813   :  { %1302 = vsyncpa [#allocation5 + $0x1], 1 }

</bundles_post_ra>
